<compile_context>
chip_gen: v7x
topology: tpu7x:2x2x1
jax: 0.10.0
libtpu: 0.0.40
codegen_flags: <defaults>
</compile_context>

<pallas_src>
import jax
import jax.numpy as jnp
import numpy as np
from jax.experimental import pallas as pl
from jax.experimental.pallas import tpu as pltpu


B_BLK = 8          # images per grid step; must stay a multiple of 8 (sublane tile)
KSZ = 5            # conv kernel size

# Layer geometry (all fixed by LeNet on 32x32x1 input):
#   conv1: 32 x (32*1)  -> 28 x (28*6)     pool1 -> 14 x (14*6)
#   conv2: 14 x (14*6)  -> 10 x (10*16)    pool2 ->  5 x (5*16)
#   conv3:  5 x (5*16)  ->  1 x (1*120)    fc1: 120->84   fc2: 84->10


# ---------------------------------------------------------------------------
# The fused Pallas kernel: one batch block (B_BLK images), whole network.
# ---------------------------------------------------------------------------
def _lenet_kernel(x_ref, t1_ref, pw1_ref, t2_ref, pw2_ref, t3_ref,
                  wfc1_ref, wfc2_ref, bias_ref, out_ref):

    def mm(a, w):
        # bf16 x bf16 MXU matmul with f32 accumulation (weights stored bf16).
        return jnp.dot(a.astype(jnp.bfloat16), w,
                       preferred_element_type=jnp.float32)

    def conv_tanh(act, t_ref, bias, h_out):
        # act: (h_in*B_BLK, w_in*c_in), rows ordered (h, b).
        # The vertical tap dy is an 8-aligned sublane slice (no row-selection
        # matmul); t_ref[dy] is the block-Toeplitz transform of the conv
        # weight, so the horizontal taps + channel contraction are one MXU
        # matmul per dy, accumulated in f32.
        acc = bias                                   # (1, w_out*c_out)
        for dy in range(KSZ):
            slab = act[dy * B_BLK:(dy + h_out) * B_BLK, :]
            acc = acc + mm(slab, t_ref[dy])
        return jnp.tanh(acc)

    def avgpool(act, pw_ref, h_out, wc):
        # act: (h_out*B_BLK, wc), rows ordered (h, b).  Rows h=2p and h=2p+1
        # of the same image sit in adjacent 8-row groups, so the row pool is a
        # regroup reshape + two aligned sublane slices + a VPU add.  The lane
        # pool is a tiny matmul with the 0.25 average folded into pw.
        g = act.reshape(h_out // 2, 2 * B_BLK, wc)
        s = g[:, :B_BLK, :] + g[:, B_BLK:, :]        # (h_out/2, B_BLK, wc)
        return mm(s.reshape((h_out // 2) * B_BLK, wc), pw_ref[...])

    x = x_ref[...].reshape(32 * B_BLK, 32)           # rows=(h, b), lanes=w

    a1 = conv_tanh(x, t1_ref, bias_ref[0:1, 0:168], 28)        # (28*8, 28*6)
    p1 = avgpool(a1, pw1_ref, 28, 168)                          # (14*8, 14*6)
    a2 = conv_tanh(p1, t2_ref, bias_ref[1:2, 0:160], 10)        # (10*8, 10*16)
    p2 = avgpool(a2, pw2_ref, 10, 160)                          # (5*8,  5*16)
    a3 = conv_tanh(p2, t3_ref, bias_ref[2:3, 0:120], 1)         # (8, 120)
    h = jnp.tanh(mm(a3, wfc1_ref[...]) + bias_ref[3:4, 0:84])   # (8, 84)
    logits = mm(h, wfc2_ref[...]) + bias_ref[4:5, 0:128]        # (8, 128) lane-dense
    out_ref[...] = logits.astype(out_ref.dtype)


# ---------------------------------------------------------------------------
# Wrapper: batch grid with resident weights, lane-dense padded output.
# ---------------------------------------------------------------------------
def lenet_forward_fused(x, ops):
    """x: (B, 1, 32, 32) float32; ops: tuple from prepare_lenet_operands()."""
    B = x.shape[0]
    n_blk = pl.cdiv(B, B_BLK)
    b_pad = n_blk * B_BLK

    # Wrapper-side layout plumbing (negligible): rows=(h, b), lanes=w.
    xh = jnp.transpose(x[:, 0, :, :], (1, 0, 2))                 # (32, B, 32)
    if b_pad != B:
        xh = jnp.pad(xh, ((0, 0), (0, b_pad - B), (0, 0)))

    in_specs = [pl.BlockSpec((32, B_BLK, 32), lambda i: (0, i, 0))]
    # Weight/bias operands: full-array blocks, constant index_map -> fetched
    # once and kept VMEM-resident across all grid steps.
    in_specs += [pl.BlockSpec(op.shape, lambda i, n=op.ndim: (0,) * n)
                 for op in ops]

    out = pl.pallas_call(
        _lenet_kernel,
        out_shape=jax.ShapeDtypeStruct((b_pad, 128), jnp.float32),
        grid=(n_blk,),
        in_specs=in_specs,
        out_specs=pl.BlockSpec((B_BLK, 128), lambda i: (i, 0)),
        compiler_params=pltpu.CompilerParams(
            dimension_semantics=("parallel",),        # v7x: 2 TCs split blocks
            vmem_limit_bytes=32 * 1024 * 1024),       # explicit, generous headroom
    )(xh, *ops)
    return out[:B, :10].astype(x.dtype)


# ---------------------------------------------------------------------------
# One-time, batch-size-independent operand preparation (host side).
# ---------------------------------------------------------------------------
def _conv_toeplitz(w, w_in, w_out):
    """w: (Cout, Cin, 5, 5) -> T: (5, w_in*Cin, w_out*Cout) with
    T[dy, wi*Cin+ci, wo*Cout+co] = w[co, ci, dy, wi-wo] for 0 <= wi-wo < 5."""
    w = np.asarray(w, np.float32)
    c_out, c_in = w.shape[0], w.shape[1]
    t = np.zeros((KSZ, w_in * c_in, w_out * c_out), np.float32)
    for dy in range(KSZ):
        for wo in range(w_out):
            for dx in range(KSZ):
                wi = wo + dx
                t[dy, wi * c_in:(wi + 1) * c_in,
                  wo * c_out:(wo + 1) * c_out] = w[:, :, dy, dx].T
    return t


def _pool_lanes(w_in, c):
    """(w_in*c, (w_in//2)*c) lane-pool matrix, 0.25 average folded in."""
    p = np.zeros((w_in * c, (w_in // 2) * c), np.float32)
    for wp in range(w_in // 2):
        for dw in range(2):
            for ch in range(c):
                p[(2 * wp + dw) * c + ch, wp * c + ch] = 0.25
    return p


def prepare_lenet_operands(params):
    w1, b1 = params["conv1"]     # (6,1,5,5), (6,)
    w2, b2 = params["conv2"]     # (16,6,5,5), (16,)
    w3, b3 = params["conv3"]     # (120,16,5,5), (120,)
    wf1, bf1 = params["fc1"]     # (84,120), (84,)
    wf2, bf2 = params["fc2"]     # (10,84), (10,)

    t1 = _conv_toeplitz(w1, 32, 28)          # (5, 32, 168)
    t2 = _conv_toeplitz(w2, 14, 10)          # (5, 84, 160)
    t3 = _conv_toeplitz(w3, 5, 1)            # (5, 80, 120)
    pw1 = _pool_lanes(28, 6)                 # (168, 84)
    pw2 = _pool_lanes(10, 16)                # (160, 80)

    wfc1 = np.asarray(wf1, np.float32).T                      # (120, 84)
    wfc2 = np.zeros((84, 128), np.float32)                    # lane-dense 10->128
    wfc2[:, :10] = np.asarray(wf2, np.float32).T

    bias = np.zeros((B_BLK, 168), np.float32)                 # packed bias slab
    bias[0, :168] = np.tile(np.asarray(b1, np.float32), 28)
    bias[1, :160] = np.tile(np.asarray(b2, np.float32), 10)
    bias[2, :120] = np.asarray(b3, np.float32)
    bias[3, :84] = np.asarray(bf1, np.float32)
    bias[4, :10] = np.asarray(bf2, np.float32)

    bf16 = lambda a: jnp.asarray(a, jnp.bfloat16)
    return (bf16(t1), bf16(pw1), bf16(t2), bf16(pw2), bf16(t3),
            bf16(wfc1), bf16(wfc2), jnp.asarray(bias, jnp.float32))


# ---------------------------------------------------------------------------
# Parameter init (PyTorch-default style) and pure-JAX reference.
# ---------------------------------------------------------------------------
def init_lenet_params(key):
    def conv_init(k, cout, cin, ksz):
        bound = 1.0 / np.sqrt(cin * ksz * ksz)
        kw, kb = jax.random.split(k)
        w = jax.random.uniform(kw, (cout, cin, ksz, ksz), jnp.float32, -bound, bound)
        b = jax.random.uniform(kb, (cout,), jnp.float32, -bound, bound)
        return w, b

    def fc_init(k, cout, cin):
        bound = 1.0 / np.sqrt(cin)
        kw, kb = jax.random.split(k)
        w = jax.random.uniform(kw, (cout, cin), jnp.float32, -bound, bound)
        b = jax.random.uniform(kb, (cout,), jnp.float32, -bound, bound)
        return w, b

    k1, k2, k3, k4, k5 = jax.random.split(key, 5)
    return {
        "conv1": conv_init(k1, 6, 1, 5),
        "conv2": conv_init(k2, 16, 6, 5),
        "conv3": conv_init(k3, 120, 16, 5),
        "fc1": fc_init(k4, 84, 120),
        "fc2": fc_init(k5, 10, 84),
    }


def lenet_reference(x, p):
    def conv(x, w, b):
        y = jax.lax.conv_general_dilated(
            x, w, window_strides=(1, 1), padding="VALID",
            dimension_numbers=("NCHW", "OIHW", "NCHW"))
        return y + b[None, :, None, None]

    def pool(x):
        B, C, H, W = x.shape
        return x.reshape(B, C, H // 2, 2, W // 2, 2).mean(axis=(3, 5))

    x = pool(jnp.tanh(conv(x, *p["conv1"])))
    x = pool(jnp.tanh(conv(x, *p["conv2"])))
    x = jnp.tanh(conv(x, *p["conv3"]))
    x = x.reshape(x.shape[0], -1)
    x = jnp.tanh(x @ p["fc1"][0].T + p["fc1"][1])
    x = x @ p["fc2"][0].T + p["fc2"][1]
    return x


if __name__ == "__main__":
    key = jax.random.PRNGKey(0)
    kx, kp = jax.random.split(key)
    # LeNet's 5x5 convs + two 2x2 pools imply a 32x32 single-channel input.
    batch = 12                        # deliberately not a multiple of B_BLK
    x = jax.random.normal(kx, (batch, 1, 32, 32), jnp.float32)
    params = init_lenet_params(kp)

    ops = prepare_lenet_operands(params)          # one-time, batch-independent
    fwd = jax.jit(lenet_forward_fused)
    out = jax.block_until_ready(fwd(x, ops))

    ref = lenet_reference(x, params)
    assert out.shape == (batch, 10), out.shape
    max_err = float(np.max(np.abs(np.asarray(out, np.float32) - np.asarray(ref))))
    # bf16 matmul operands with f32 accumulation; tanh keeps error propagation
    # tightly bounded, so the observed error stays well below this tolerance.
    assert max_err < 3e-2, ("max abs diff vs f32 reference", max_err)
    print("KERNEL_OK")
</pallas_src>

<mosaic_0001>
module attributes {stable_mosaic.version = 11 : i64} {
  func.func @_lenet_kernel(%arg0: i32, %arg1: memref<32x8x32xf32, #tpu.memory_space<vmem>>, %arg2: memref<5x32x168xbf16, #tpu.memory_space<vmem>>, %arg3: memref<168x84xbf16, #tpu.memory_space<vmem>>, %arg4: memref<5x84x160xbf16, #tpu.memory_space<vmem>>, %arg5: memref<160x80xbf16, #tpu.memory_space<vmem>>, %arg6: memref<5x80x120xbf16, #tpu.memory_space<vmem>>, %arg7: memref<120x84xbf16, #tpu.memory_space<vmem>>, %arg8: memref<84x128xbf16, #tpu.memory_space<vmem>>, %arg9: memref<8x168xf32, #tpu.memory_space<vmem>>, %arg10: memref<8x128xf32, #tpu.memory_space<vmem>>) attributes {dimension_semantics = [#tpu.dimension_semantics<parallel>], iteration_bounds = array<i64: 2>, scalar_prefetch = 0 : i64, scratch_operands = 0 : i64, tpu.core_type = #tpu.core_type<tc>, window_params = [{transform_indices = @transform_0, window_bounds = array<i64: 32, 8, 32>}, {pipeline_mode = #tpu.pipeline_mode<synchronous>, transform_indices = @transform_1, window_bounds = array<i64: 5, 32, 168>}, {pipeline_mode = #tpu.pipeline_mode<synchronous>, transform_indices = @transform_2, window_bounds = array<i64: 168, 84>}, {pipeline_mode = #tpu.pipeline_mode<synchronous>, transform_indices = @transform_3, window_bounds = array<i64: 5, 84, 160>}, {pipeline_mode = #tpu.pipeline_mode<synchronous>, transform_indices = @transform_4, window_bounds = array<i64: 160, 80>}, {pipeline_mode = #tpu.pipeline_mode<synchronous>, transform_indices = @transform_5, window_bounds = array<i64: 5, 80, 120>}, {pipeline_mode = #tpu.pipeline_mode<synchronous>, transform_indices = @transform_6, window_bounds = array<i64: 120, 84>}, {pipeline_mode = #tpu.pipeline_mode<synchronous>, transform_indices = @transform_7, window_bounds = array<i64: 84, 128>}, {pipeline_mode = #tpu.pipeline_mode<synchronous>, transform_indices = @transform_8, window_bounds = array<i64: 8, 168>}, {transform_indices = @transform_9, window_bounds = array<i64: 8, 128>}]} {
    %c0 = arith.constant 0 : index
    %c0_0 = arith.constant 0 : index
    %c0_1 = arith.constant 0 : index
    %0 = vector.load %arg1[%c0, %c0_0, %c0_1] : memref<32x8x32xf32, #tpu.memory_space<vmem>>, vector<32x8x32xf32>
    %1 = vector.shape_cast %0 : vector<32x8x32xf32> to vector<256x32xf32>
    %c0_2 = arith.constant 0 : index
    %c0_3 = arith.constant 0 : index
    %2 = vector.load %arg9[%c0_2, %c0_3] : memref<8x168xf32, #tpu.memory_space<vmem>>, vector<1x168xf32>
    %3 = vector.extract_strided_slice %1 {offsets = [0, 0], sizes = [224, 32], strides = [1, 1]} : vector<256x32xf32> to vector<224x32xf32>
    %c0_4 = arith.constant 0 : index
    %c0_5 = arith.constant 0 : index
    %c0_6 = arith.constant 0 : index
    %4 = vector.load %arg2[%c0_4, %c0_5, %c0_6] : memref<5x32x168xbf16, #tpu.memory_space<vmem>>, vector<1x32x168xbf16>
    %5 = vector.shape_cast %4 : vector<1x32x168xbf16> to vector<32x168xbf16>
    %6 = arith.truncf %3 : vector<224x32xf32> to vector<224x32xbf16>
    %cst = arith.constant dense<0.000000e+00> : vector<224x168xf32>
    %7 = tpu.matmul %6, %5, %cst {dimension_numbers = #tpu.dot_dimension_numbers<[1], [0], [0], [1], [0, 0, 1, 1], [], []>} : vector<224x32xbf16>, vector<32x168xbf16>, vector<224x168xf32> -> vector<224x168xf32>
    %8 = vector.broadcast %2 : vector<1x168xf32> to vector<224x168xf32>
    %9 = arith.addf %8, %7 : vector<224x168xf32>
    %10 = vector.extract_strided_slice %1 {offsets = [8, 0], sizes = [224, 32], strides = [1, 1]} : vector<256x32xf32> to vector<224x32xf32>
    %c1 = arith.constant 1 : index
    %c0_7 = arith.constant 0 : index
    %c0_8 = arith.constant 0 : index
    %11 = vector.load %arg2[%c1, %c0_7, %c0_8] : memref<5x32x168xbf16, #tpu.memory_space<vmem>>, vector<1x32x168xbf16>
    %12 = vector.shape_cast %11 : vector<1x32x168xbf16> to vector<32x168xbf16>
    %13 = arith.truncf %10 : vector<224x32xf32> to vector<224x32xbf16>
    %cst_9 = arith.constant dense<0.000000e+00> : vector<224x168xf32>
    %14 = tpu.matmul %13, %12, %cst_9 {dimension_numbers = #tpu.dot_dimension_numbers<[1], [0], [0], [1], [0, 0, 1, 1], [], []>} : vector<224x32xbf16>, vector<32x168xbf16>, vector<224x168xf32> -> vector<224x168xf32>
    %15 = arith.addf %9, %14 : vector<224x168xf32>
    %16 = vector.extract_strided_slice %1 {offsets = [16, 0], sizes = [224, 32], strides = [1, 1]} : vector<256x32xf32> to vector<224x32xf32>
    %c2 = arith.constant 2 : index
    %c0_10 = arith.constant 0 : index
    %c0_11 = arith.constant 0 : index
    %17 = vector.load %arg2[%c2, %c0_10, %c0_11] : memref<5x32x168xbf16, #tpu.memory_space<vmem>>, vector<1x32x168xbf16>
    %18 = vector.shape_cast %17 : vector<1x32x168xbf16> to vector<32x168xbf16>
    %19 = arith.truncf %16 : vector<224x32xf32> to vector<224x32xbf16>
    %cst_12 = arith.constant dense<0.000000e+00> : vector<224x168xf32>
    %20 = tpu.matmul %19, %18, %cst_12 {dimension_numbers = #tpu.dot_dimension_numbers<[1], [0], [0], [1], [0, 0, 1, 1], [], []>} : vector<224x32xbf16>, vector<32x168xbf16>, vector<224x168xf32> -> vector<224x168xf32>
    %21 = arith.addf %15, %20 : vector<224x168xf32>
    %22 = vector.extract_strided_slice %1 {offsets = [24, 0], sizes = [224, 32], strides = [1, 1]} : vector<256x32xf32> to vector<224x32xf32>
    %c3 = arith.constant 3 : index
    %c0_13 = arith.constant 0 : index
    %c0_14 = arith.constant 0 : index
    %23 = vector.load %arg2[%c3, %c0_13, %c0_14] : memref<5x32x168xbf16, #tpu.memory_space<vmem>>, vector<1x32x168xbf16>
    %24 = vector.shape_cast %23 : vector<1x32x168xbf16> to vector<32x168xbf16>
    %25 = arith.truncf %22 : vector<224x32xf32> to vector<224x32xbf16>
    %cst_15 = arith.constant dense<0.000000e+00> : vector<224x168xf32>
    %26 = tpu.matmul %25, %24, %cst_15 {dimension_numbers = #tpu.dot_dimension_numbers<[1], [0], [0], [1], [0, 0, 1, 1], [], []>} : vector<224x32xbf16>, vector<32x168xbf16>, vector<224x168xf32> -> vector<224x168xf32>
    %27 = arith.addf %21, %26 : vector<224x168xf32>
    %28 = vector.extract_strided_slice %1 {offsets = [32, 0], sizes = [224, 32], strides = [1, 1]} : vector<256x32xf32> to vector<224x32xf32>
    %c4 = arith.constant 4 : index
    %c0_16 = arith.constant 0 : index
    %c0_17 = arith.constant 0 : index
    %29 = vector.load %arg2[%c4, %c0_16, %c0_17] : memref<5x32x168xbf16, #tpu.memory_space<vmem>>, vector<1x32x168xbf16>
    %30 = vector.shape_cast %29 : vector<1x32x168xbf16> to vector<32x168xbf16>
    %31 = arith.truncf %28 : vector<224x32xf32> to vector<224x32xbf16>
    %cst_18 = arith.constant dense<0.000000e+00> : vector<224x168xf32>
    %32 = tpu.matmul %31, %30, %cst_18 {dimension_numbers = #tpu.dot_dimension_numbers<[1], [0], [0], [1], [0, 0, 1, 1], [], []>} : vector<224x32xbf16>, vector<32x168xbf16>, vector<224x168xf32> -> vector<224x168xf32>
    %33 = arith.addf %27, %32 : vector<224x168xf32>
    %34 = math.tanh %33 : vector<224x168xf32>
    %35 = vector.shape_cast %34 : vector<224x168xf32> to vector<14x16x168xf32>
    %36 = vector.extract_strided_slice %35 {offsets = [0, 0, 0], sizes = [14, 8, 168], strides = [1, 1, 1]} : vector<14x16x168xf32> to vector<14x8x168xf32>
    %37 = vector.extract_strided_slice %35 {offsets = [0, 8, 0], sizes = [14, 8, 168], strides = [1, 1, 1]} : vector<14x16x168xf32> to vector<14x8x168xf32>
    %38 = arith.addf %36, %37 : vector<14x8x168xf32>
    %39 = vector.shape_cast %38 : vector<14x8x168xf32> to vector<112x168xf32>
    %c0_19 = arith.constant 0 : index
    %c0_20 = arith.constant 0 : index
    %40 = vector.load %arg3[%c0_19, %c0_20] : memref<168x84xbf16, #tpu.memory_space<vmem>>, vector<168x84xbf16>
    %41 = arith.truncf %39 : vector<112x168xf32> to vector<112x168xbf16>
    %cst_21 = arith.constant dense<0.000000e+00> : vector<112x84xf32>
    %42 = tpu.matmul %41, %40, %cst_21 {dimension_numbers = #tpu.dot_dimension_numbers<[1], [0], [0], [1], [0, 0, 1, 1], [], []>} : vector<112x168xbf16>, vector<168x84xbf16>, vector<112x84xf32> -> vector<112x84xf32>
    %c1_22 = arith.constant 1 : index
    %c0_23 = arith.constant 0 : index
    %43 = vector.load %arg9[%c1_22, %c0_23] : memref<8x168xf32, #tpu.memory_space<vmem>>, vector<1x160xf32>
    %44 = vector.extract_strided_slice %42 {offsets = [0, 0], sizes = [80, 84], strides = [1, 1]} : vector<112x84xf32> to vector<80x84xf32>
    %c0_24 = arith.constant 0 : index
    %c0_25 = arith.constant 0 : index
    %c0_26 = arith.constant 0 : index
    %45 = vector.load %arg4[%c0_24, %c0_25, %c0_26] : memref<5x84x160xbf16, #tpu.memory_space<vmem>>, vector<1x84x160xbf16>
    %46 = vector.shape_cast %45 : vector<1x84x160xbf16> to vector<84x160xbf16>
    %47 = arith.truncf %44 : vector<80x84xf32> to vector<80x84xbf16>
    %cst_27 = arith.constant dense<0.000000e+00> : vector<80x160xf32>
    %48 = tpu.matmul %47, %46, %cst_27 {dimension_numbers = #tpu.dot_dimension_numbers<[1], [0], [0], [1], [0, 0, 1, 1], [], []>} : vector<80x84xbf16>, vector<84x160xbf16>, vector<80x160xf32> -> vector<80x160xf32>
    %49 = vector.broadcast %43 : vector<1x160xf32> to vector<80x160xf32>
    %50 = arith.addf %49, %48 : vector<80x160xf32>
    %51 = vector.extract_strided_slice %42 {offsets = [8, 0], sizes = [80, 84], strides = [1, 1]} : vector<112x84xf32> to vector<80x84xf32>
    %c1_28 = arith.constant 1 : index
    %c0_29 = arith.constant 0 : index
    %c0_30 = arith.constant 0 : index
    %52 = vector.load %arg4[%c1_28, %c0_29, %c0_30] : memref<5x84x160xbf16, #tpu.memory_space<vmem>>, vector<1x84x160xbf16>
    %53 = vector.shape_cast %52 : vector<1x84x160xbf16> to vector<84x160xbf16>
    %54 = arith.truncf %51 : vector<80x84xf32> to vector<80x84xbf16>
    %cst_31 = arith.constant dense<0.000000e+00> : vector<80x160xf32>
    %55 = tpu.matmul %54, %53, %cst_31 {dimension_numbers = #tpu.dot_dimension_numbers<[1], [0], [0], [1], [0, 0, 1, 1], [], []>} : vector<80x84xbf16>, vector<84x160xbf16>, vector<80x160xf32> -> vector<80x160xf32>
    %56 = arith.addf %50, %55 : vector<80x160xf32>
    %57 = vector.extract_strided_slice %42 {offsets = [16, 0], sizes = [80, 84], strides = [1, 1]} : vector<112x84xf32> to vector<80x84xf32>
    %c2_32 = arith.constant 2 : index
    %c0_33 = arith.constant 0 : index
    %c0_34 = arith.constant 0 : index
    %58 = vector.load %arg4[%c2_32, %c0_33, %c0_34] : memref<5x84x160xbf16, #tpu.memory_space<vmem>>, vector<1x84x160xbf16>
    %59 = vector.shape_cast %58 : vector<1x84x160xbf16> to vector<84x160xbf16>
    %60 = arith.truncf %57 : vector<80x84xf32> to vector<80x84xbf16>
    %cst_35 = arith.constant dense<0.000000e+00> : vector<80x160xf32>
    %61 = tpu.matmul %60, %59, %cst_35 {dimension_numbers = #tpu.dot_dimension_numbers<[1], [0], [0], [1], [0, 0, 1, 1], [], []>} : vector<80x84xbf16>, vector<84x160xbf16>, vector<80x160xf32> -> vector<80x160xf32>
    %62 = arith.addf %56, %61 : vector<80x160xf32>
    %63 = vector.extract_strided_slice %42 {offsets = [24, 0], sizes = [80, 84], strides = [1, 1]} : vector<112x84xf32> to vector<80x84xf32>
    %c3_36 = arith.constant 3 : index
    %c0_37 = arith.constant 0 : index
    %c0_38 = arith.constant 0 : index
    %64 = vector.load %arg4[%c3_36, %c0_37, %c0_38] : memref<5x84x160xbf16, #tpu.memory_space<vmem>>, vector<1x84x160xbf16>
    %65 = vector.shape_cast %64 : vector<1x84x160xbf16> to vector<84x160xbf16>
    %66 = arith.truncf %63 : vector<80x84xf32> to vector<80x84xbf16>
    %cst_39 = arith.constant dense<0.000000e+00> : vector<80x160xf32>
    %67 = tpu.matmul %66, %65, %cst_39 {dimension_numbers = #tpu.dot_dimension_numbers<[1], [0], [0], [1], [0, 0, 1, 1], [], []>} : vector<80x84xbf16>, vector<84x160xbf16>, vector<80x160xf32> -> vector<80x160xf32>
    %68 = arith.addf %62, %67 : vector<80x160xf32>
    %69 = vector.extract_strided_slice %42 {offsets = [32, 0], sizes = [80, 84], strides = [1, 1]} : vector<112x84xf32> to vector<80x84xf32>
    %c4_40 = arith.constant 4 : index
    %c0_41 = arith.constant 0 : index
    %c0_42 = arith.constant 0 : index
    %70 = vector.load %arg4[%c4_40, %c0_41, %c0_42] : memref<5x84x160xbf16, #tpu.memory_space<vmem>>, vector<1x84x160xbf16>
    %71 = vector.shape_cast %70 : vector<1x84x160xbf16> to vector<84x160xbf16>
    %72 = arith.truncf %69 : vector<80x84xf32> to vector<80x84xbf16>
    %cst_43 = arith.constant dense<0.000000e+00> : vector<80x160xf32>
    %73 = tpu.matmul %72, %71, %cst_43 {dimension_numbers = #tpu.dot_dimension_numbers<[1], [0], [0], [1], [0, 0, 1, 1], [], []>} : vector<80x84xbf16>, vector<84x160xbf16>, vector<80x160xf32> -> vector<80x160xf32>
    %74 = arith.addf %68, %73 : vector<80x160xf32>
    %75 = math.tanh %74 : vector<80x160xf32>
    %76 = vector.shape_cast %75 : vector<80x160xf32> to vector<5x16x160xf32>
    %77 = vector.extract_strided_slice %76 {offsets = [0, 0, 0], sizes = [5, 8, 160], strides = [1, 1, 1]} : vector<5x16x160xf32> to vector<5x8x160xf32>
    %78 = vector.extract_strided_slice %76 {offsets = [0, 8, 0], sizes = [5, 8, 160], strides = [1, 1, 1]} : vector<5x16x160xf32> to vector<5x8x160xf32>
    %79 = arith.addf %77, %78 : vector<5x8x160xf32>
    %80 = vector.shape_cast %79 : vector<5x8x160xf32> to vector<40x160xf32>
    %c0_44 = arith.constant 0 : index
    %c0_45 = arith.constant 0 : index
    %81 = vector.load %arg5[%c0_44, %c0_45] : memref<160x80xbf16, #tpu.memory_space<vmem>>, vector<160x80xbf16>
    %82 = arith.truncf %80 : vector<40x160xf32> to vector<40x160xbf16>
    %cst_46 = arith.constant dense<0.000000e+00> : vector<40x80xf32>
    %83 = tpu.matmul %82, %81, %cst_46 {dimension_numbers = #tpu.dot_dimension_numbers<[1], [0], [0], [1], [0, 0, 1, 1], [], []>} : vector<40x160xbf16>, vector<160x80xbf16>, vector<40x80xf32> -> vector<40x80xf32>
    %c2_47 = arith.constant 2 : index
    %c0_48 = arith.constant 0 : index
    %84 = vector.load %arg9[%c2_47, %c0_48] : memref<8x168xf32, #tpu.memory_space<vmem>>, vector<1x120xf32>
    %85 = vector.extract_strided_slice %83 {offsets = [0, 0], sizes = [8, 80], strides = [1, 1]} : vector<40x80xf32> to vector<8x80xf32>
    %c0_49 = arith.constant 0 : index
    %c0_50 = arith.constant 0 : index
    %c0_51 = arith.constant 0 : index
    %86 = vector.load %arg6[%c0_49, %c0_50, %c0_51] : memref<5x80x120xbf16, #tpu.memory_space<vmem>>, vector<1x80x120xbf16>
    %87 = vector.shape_cast %86 : vector<1x80x120xbf16> to vector<80x120xbf16>
    %88 = arith.truncf %85 : vector<8x80xf32> to vector<8x80xbf16>
    %cst_52 = arith.constant dense<0.000000e+00> : vector<8x120xf32>
    %89 = tpu.matmul %88, %87, %cst_52 {dimension_numbers = #tpu.dot_dimension_numbers<[1], [0], [0], [1], [0, 0, 1, 1], [], []>} : vector<8x80xbf16>, vector<80x120xbf16>, vector<8x120xf32> -> vector<8x120xf32>
    %90 = vector.broadcast %84 : vector<1x120xf32> to vector<8x120xf32>
    %91 = arith.addf %90, %89 : vector<8x120xf32>
    %92 = vector.extract_strided_slice %83 {offsets = [8, 0], sizes = [8, 80], strides = [1, 1]} : vector<40x80xf32> to vector<8x80xf32>
    %c1_53 = arith.constant 1 : index
    %c0_54 = arith.constant 0 : index
    %c0_55 = arith.constant 0 : index
    %93 = vector.load %arg6[%c1_53, %c0_54, %c0_55] : memref<5x80x120xbf16, #tpu.memory_space<vmem>>, vector<1x80x120xbf16>
    %94 = vector.shape_cast %93 : vector<1x80x120xbf16> to vector<80x120xbf16>
    %95 = arith.truncf %92 : vector<8x80xf32> to vector<8x80xbf16>
    %cst_56 = arith.constant dense<0.000000e+00> : vector<8x120xf32>
    %96 = tpu.matmul %95, %94, %cst_56 {dimension_numbers = #tpu.dot_dimension_numbers<[1], [0], [0], [1], [0, 0, 1, 1], [], []>} : vector<8x80xbf16>, vector<80x120xbf16>, vector<8x120xf32> -> vector<8x120xf32>
    %97 = arith.addf %91, %96 : vector<8x120xf32>
    %98 = vector.extract_strided_slice %83 {offsets = [16, 0], sizes = [8, 80], strides = [1, 1]} : vector<40x80xf32> to vector<8x80xf32>
    %c2_57 = arith.constant 2 : index
    %c0_58 = arith.constant 0 : index
    %c0_59 = arith.constant 0 : index
    %99 = vector.load %arg6[%c2_57, %c0_58, %c0_59] : memref<5x80x120xbf16, #tpu.memory_space<vmem>>, vector<1x80x120xbf16>
    %100 = vector.shape_cast %99 : vector<1x80x120xbf16> to vector<80x120xbf16>
    %101 = arith.truncf %98 : vector<8x80xf32> to vector<8x80xbf16>
    %cst_60 = arith.constant dense<0.000000e+00> : vector<8x120xf32>
    %102 = tpu.matmul %101, %100, %cst_60 {dimension_numbers = #tpu.dot_dimension_numbers<[1], [0], [0], [1], [0, 0, 1, 1], [], []>} : vector<8x80xbf16>, vector<80x120xbf16>, vector<8x120xf32> -> vector<8x120xf32>
    %103 = arith.addf %97, %102 : vector<8x120xf32>
    %104 = vector.extract_strided_slice %83 {offsets = [24, 0], sizes = [8, 80], strides = [1, 1]} : vector<40x80xf32> to vector<8x80xf32>
    %c3_61 = arith.constant 3 : index
    %c0_62 = arith.constant 0 : index
    %c0_63 = arith.constant 0 : index
    %105 = vector.load %arg6[%c3_61, %c0_62, %c0_63] : memref<5x80x120xbf16, #tpu.memory_space<vmem>>, vector<1x80x120xbf16>
    %106 = vector.shape_cast %105 : vector<1x80x120xbf16> to vector<80x120xbf16>
    %107 = arith.truncf %104 : vector<8x80xf32> to vector<8x80xbf16>
    %cst_64 = arith.constant dense<0.000000e+00> : vector<8x120xf32>
    %108 = tpu.matmul %107, %106, %cst_64 {dimension_numbers = #tpu.dot_dimension_numbers<[1], [0], [0], [1], [0, 0, 1, 1], [], []>} : vector<8x80xbf16>, vector<80x120xbf16>, vector<8x120xf32> -> vector<8x120xf32>
    %109 = arith.addf %103, %108 : vector<8x120xf32>
    %110 = vector.extract_strided_slice %83 {offsets = [32, 0], sizes = [8, 80], strides = [1, 1]} : vector<40x80xf32> to vector<8x80xf32>
    %c4_65 = arith.constant 4 : index
    %c0_66 = arith.constant 0 : index
    %c0_67 = arith.constant 0 : index
    %111 = vector.load %arg6[%c4_65, %c0_66, %c0_67] : memref<5x80x120xbf16, #tpu.memory_space<vmem>>, vector<1x80x120xbf16>
    %112 = vector.shape_cast %111 : vector<1x80x120xbf16> to vector<80x120xbf16>
    %113 = arith.truncf %110 : vector<8x80xf32> to vector<8x80xbf16>
    %cst_68 = arith.constant dense<0.000000e+00> : vector<8x120xf32>
    %114 = tpu.matmul %113, %112, %cst_68 {dimension_numbers = #tpu.dot_dimension_numbers<[1], [0], [0], [1], [0, 0, 1, 1], [], []>} : vector<8x80xbf16>, vector<80x120xbf16>, vector<8x120xf32> -> vector<8x120xf32>
    %115 = arith.addf %109, %114 : vector<8x120xf32>
    %116 = math.tanh %115 : vector<8x120xf32>
    %c0_69 = arith.constant 0 : index
    %c0_70 = arith.constant 0 : index
    %117 = vector.load %arg7[%c0_69, %c0_70] : memref<120x84xbf16, #tpu.memory_space<vmem>>, vector<120x84xbf16>
    %118 = arith.truncf %116 : vector<8x120xf32> to vector<8x120xbf16>
    %cst_71 = arith.constant dense<0.000000e+00> : vector<8x84xf32>
    %119 = tpu.matmul %118, %117, %cst_71 {dimension_numbers = #tpu.dot_dimension_numbers<[1], [0], [0], [1], [0, 0, 1, 1], [], []>} : vector<8x120xbf16>, vector<120x84xbf16>, vector<8x84xf32> -> vector<8x84xf32>
    %c3_72 = arith.constant 3 : index
    %c0_73 = arith.constant 0 : index
    %120 = vector.load %arg9[%c3_72, %c0_73] : memref<8x168xf32, #tpu.memory_space<vmem>>, vector<1x84xf32>
    %121 = vector.broadcast %120 : vector<1x84xf32> to vector<8x84xf32>
    %122 = arith.addf %119, %121 : vector<8x84xf32>
    %123 = math.tanh %122 : vector<8x84xf32>
    %c0_74 = arith.constant 0 : index
    %c0_75 = arith.constant 0 : index
    %124 = vector.load %arg8[%c0_74, %c0_75] : memref<84x128xbf16, #tpu.memory_space<vmem>>, vector<84x128xbf16>
    %125 = arith.truncf %123 : vector<8x84xf32> to vector<8x84xbf16>
    %cst_76 = arith.constant dense<0.000000e+00> : vector<8x128xf32>
    %126 = tpu.matmul %125, %124, %cst_76 {dimension_numbers = #tpu.dot_dimension_numbers<[1], [0], [0], [1], [0, 0, 1, 1], [], []>} : vector<8x84xbf16>, vector<84x128xbf16>, vector<8x128xf32> -> vector<8x128xf32>
    %c4_77 = arith.constant 4 : index
    %c0_78 = arith.constant 0 : index
    %127 = vector.load %arg9[%c4_77, %c0_78] : memref<8x168xf32, #tpu.memory_space<vmem>>, vector<1x128xf32>
    %128 = vector.broadcast %127 : vector<1x128xf32> to vector<8x128xf32>
    %129 = arith.addf %126, %128 : vector<8x128xf32>
    %c0_79 = arith.constant 0 : index
    %c0_80 = arith.constant 0 : index
    %130 = vector.load %arg10[%c0_79, %c0_80] : memref<8x128xf32, #tpu.memory_space<vmem>>, vector<8x128xf32>
    tpu.vector_store %arg10[%c0_79, %c0_80], %129 {strides = array<i32>} : memref<8x128xf32, #tpu.memory_space<vmem>>, vector<8x128xf32>,
    return
  }
  func.func @transform_0(%arg0: i32) -> (i32, i32, i32) {
    %c0_i32 = arith.constant 0 : i32
    %c0_i32_0 = arith.constant 0 : i32
    %c0_i32_1 = arith.constant 0 : i32
    return %c0_i32, %arg0, %c0_i32_0 : i32, i32, i32
  }
  func.func @transform_1(%arg0: i32) -> (i32, i32, i32) {
    %c0_i32 = arith.constant 0 : i32
    %c0_i32_0 = arith.constant 0 : i32
    %c0_i32_1 = arith.constant 0 : i32
    %c0_i32_2 = arith.constant 0 : i32
    return %c0_i32, %c0_i32_0, %c0_i32_1 : i32, i32, i32
  }
  func.func @transform_2(%arg0: i32) -> (i32, i32) {
    %c0_i32 = arith.constant 0 : i32
    %c0_i32_0 = arith.constant 0 : i32
    %c0_i32_1 = arith.constant 0 : i32
    return %c0_i32, %c0_i32_0 : i32, i32
  }
  func.func @transform_3(%arg0: i32) -> (i32, i32, i32) {
    %c0_i32 = arith.constant 0 : i32
    %c0_i32_0 = arith.constant 0 : i32
    %c0_i32_1 = arith.constant 0 : i32
    %c0_i32_2 = arith.constant 0 : i32
    return %c0_i32, %c0_i32_0, %c0_i32_1 : i32, i32, i32
  }
  func.func @transform_4(%arg0: i32) -> (i32, i32) {
    %c0_i32 = arith.constant 0 : i32
    %c0_i32_0 = arith.constant 0 : i32
    %c0_i32_1 = arith.constant 0 : i32
    return %c0_i32, %c0_i32_0 : i32, i32
  }
  func.func @transform_5(%arg0: i32) -> (i32, i32, i32) {
    %c0_i32 = arith.constant 0 : i32
    %c0_i32_0 = arith.constant 0 : i32
    %c0_i32_1 = arith.constant 0 : i32
    %c0_i32_2 = arith.constant 0 : i32
    return %c0_i32, %c0_i32_0, %c0_i32_1 : i32, i32, i32
  }
  func.func @transform_6(%arg0: i32) -> (i32, i32) {
    %c0_i32 = arith.constant 0 : i32
    %c0_i32_0 = arith.constant 0 : i32
    %c0_i32_1 = arith.constant 0 : i32
    return %c0_i32, %c0_i32_0 : i32, i32
  }
  func.func @transform_7(%arg0: i32) -> (i32, i32) {
    %c0_i32 = arith.constant 0 : i32
    %c0_i32_0 = arith.constant 0 : i32
    %c0_i32_1 = arith.constant 0 : i32
    return %c0_i32, %c0_i32_0 : i32, i32
  }
  func.func @transform_8(%arg0: i32) -> (i32, i32) {
    %c0_i32 = arith.constant 0 : i32
    %c0_i32_0 = arith.constant 0 : i32
    %c0_i32_1 = arith.constant 0 : i32
    return %c0_i32, %c0_i32_0 : i32, i32
  }
  func.func @transform_9(%arg0: i32) -> (i32, i32) {
    %c0_i32 = arith.constant 0 : i32
    %c0_i32_0 = arith.constant 0 : i32
    return %arg0, %c0_i32 : i32, i32
  }
}

</mosaic_0001>

<bundles_post_ra>
// kernel: lenet_forward_fused.1
= control target key start
LH: loop header
LB: loop body
LE: loop exit
PB: predicated region body
PF: predicated region fallthrough
CT: control target
= control target key end

     0   :  { %14 = vsyncpa [#allocation4], 0  ;;  %s6777_s0 = inlined_call_operand.vmem [shape: f32[32,16,32], index: 0, kind: input, shape index: {}]   ;;  %s6778_s1 = inlined_call_operand.vmem [shape: bf16[5,32,168], index: 1, kind: input, shape index: {}]   ;;  %s6779_s2 = inlined_call_operand.vmem [shape: bf16[168,84], index: 2, kind: input, shape index: {}]   ;;  %s6780_s3 = inlined_call_operand.vmem [shape: bf16[5,84,160], index: 3, kind: input, shape index: {}]   ;;  %s6781_s4 = inlined_call_operand.vmem [shape: bf16[160,80], index: 4, kind: input, shape index: {}]   ;;  %s6782_s5 = inlined_call_operand.vmem [shape: bf16[5,80,120], index: 5, kind: input, shape index: {}]   ;;  %s6783_s6 = inlined_call_operand.vmem [shape: bf16[120,84], index: 6, kind: input, shape index: {}]   ;;  %s6784_s7 = inlined_call_operand.vmem [shape: bf16[84,128], index: 7, kind: input, shape index: {}]   ;;  %s6785_s8 = inlined_call_operand.vmem [shape: f32[8,168], index: 8, kind: input, shape index: {}]   ;;  %s6786_s9 = inlined_call_operand.hbm [shape: f32[16,128], index: 9, kind: output, shape index: {}]  }
   0x1   :  { %16 = vsyncpa [#allocation4 + $0x1], 0  ;;  %s5480_s30 = smov 0   ;;  %s5482_s10 = smov 0  }
   0x2   :  { %s5484_s11 = smov 0   ;;  %s5486_s12 = smov 0  }
   0x3 LB: > { %s4065_s13 = sadd.s32 4294967295, %s5424_s12   ;;  %s4066_s14 = sadd.s32 4294967294, %s5424_s12   ;;  %s5424_s12 = sphi %s5486_s12, %s6792_s12   ;;  %s5420_s11 = sphi %s5484_s11, %s6791_s11   ;;  %s5416_s10 = sphi %s5482_s10, %s6790_s10   ;;  %s5412_s30 = sphi %s5480_s30, %s6789_s30  }
   0x4   : > { %s5503_s15 = sadd.s32 1, %s5424_s12   ;;  %s29_s16 = sadd.s32 1, %s5420_s11 }
   0x5   : > { %s26_s17 = ssub.s32 %s5424_s12, %s5503_s15  ;;  %p36_p0 = scmp.ne.s32.totalorder %s5420_s11, %s5416_s10 }
   0x6   : > { %p27_p1 = scmp.eq.s32.totalorder %s26_s17, 0  ;;  %p37_p2 = scmp.eq.s32.totalorder %s5424_s12, 0 }
   0x7   : > { %p234_p3 = scmp.eq.s32.totalorder %s4065_s13, 1  ;;  %p239_p4 = scmp.ne.s32.totalorder %s5416_s10, %s5412_s30 }
   0x8   : > { %s5516_s18 = scalar_select %p27_p1, %s5420_s11, %s29_s16  }
   0x9   : > { %p38_p5 = por %p37_p2, %p36_p0  ;;  %p5518_p6 = por %p234_p3, %p36_p0 }
   0xa   : > { %p240_p7 = scmp.eq.s32.totalorder %s4066_s14, 1  ;;  %p4068_p9 = scmp.ge.s32.totalorder %s5424_s12, 2 }
   0xc   : > { %p5522_p8 = por %p240_p7, %p239_p4  ;;  %280 = sbr.rel (%p4068_p9) target bundleno = 39 (0x27), region = 48 }
  0x13   : > { %283 = sbr.rel (!%p38_p5) target bundleno = 39 (0x27), region = 52  ;;  %s285_s21 = sand.u32 (%p38_p5), 1, %s5420_s11  }
  0x14   : > { %s4070_s22 = sshll.u32 (%p38_p5), %s5424_s12, 3  ;;  %s4069_s23 = sshll.u32 (%p38_p5), %s285_s21, 8 }
  0x15   : > { %s5534_s26 = scalar_lea.vmem (%p38_p5), %s6777_s0, %s4070_s22  ;;  %s5539_s27 = scalar_lea.vmem (%p38_p5), [#allocation2], %s4069_s23 }
  0x16   : > { %v379_v0 = vld [vmem:[%s5534_s26] sm:$0xff] (%p38_p5)  ;;  %v381_v1 = vld [vmem:[%s5534_s26 + $0x10] sm:$0xff] (%p38_p5) }
  0x17   : > { %v383_v2 = vld [vmem:[%s5534_s26 + $0x20] sm:$0xff] (%p38_p5)  ;;  %380 = vst [vmem:[%s5539_s27] sm:$0xff] (%p38_p5), %v379_v0  ;;  %382 = vst [vmem:[%s5539_s27 + $0x8] sm:$0xff] (%p38_p5), %v381_v1  ;;  %v385_v3 = vld [vmem:[%s5534_s26 + $0x30] sm:$0xff] (%p38_p5) }
  0x18   : > { %384 = vst [vmem:[%s5539_s27 + $0x10] sm:$0xff] (%p38_p5), %v383_v2  ;;  %v387_v4 = vld [vmem:[%s5534_s26 + $0x40] sm:$0xff] (%p38_p5)  ;;  %v389_v5 = vld [vmem:[%s5534_s26 + $0x50] sm:$0xff] (%p38_p5)  ;;  %386 = vst [vmem:[%s5539_s27 + $0x18] sm:$0xff] (%p38_p5), %v385_v3 }
  0x19   : > { %388 = vst [vmem:[%s5539_s27 + $0x20] sm:$0xff] (%p38_p5), %v387_v4  ;;  %390 = vst [vmem:[%s5539_s27 + $0x28] sm:$0xff] (%p38_p5), %v389_v5  ;;  %v391_v6 = vld [vmem:[%s5534_s26 + $0x60] sm:$0xff] (%p38_p5)  ;;  %v393_v7 = vld [vmem:[%s5534_s26 + $0x70] sm:$0xff] (%p38_p5) }
  0x1a   : > { %v395_v8 = vld [vmem:[%s5534_s26 + $0x80] sm:$0xff]  ;;  %392 = vst [vmem:[%s5539_s27 + $0x30] sm:$0xff] %v391_v6  ;;  %394 = vst [vmem:[%s5539_s27 + $0x38] sm:$0xff] %v393_v7  ;;  %v397_v9 = vld [vmem:[%s5534_s26 + $0x90] sm:$0xff] }
  0x1b   : > { %396 = vst [vmem:[%s5539_s27 + $0x40] sm:$0xff] %v395_v8  ;;  %v399_v10 = vld [vmem:[%s5534_s26 + $0xa0] sm:$0xff]  ;;  %v401_v11 = vld [vmem:[%s5534_s26 + $0xb0] sm:$0xff]  ;;  %398 = vst [vmem:[%s5539_s27 + $0x48] sm:$0xff] %v397_v9 }
  0x1c   : > { %400 = vst [vmem:[%s5539_s27 + $0x50] sm:$0xff] %v399_v10  ;;  %402 = vst [vmem:[%s5539_s27 + $0x58] sm:$0xff] %v401_v11  ;;  %v403_v12 = vld [vmem:[%s5534_s26 + $0xc0] sm:$0xff]  ;;  %v405_v13 = vld [vmem:[%s5534_s26 + $0xd0] sm:$0xff] }
  0x1d   : > { %v407_v14 = vld [vmem:[%s5534_s26 + $0xe0] sm:$0xff]  ;;  %404 = vst [vmem:[%s5539_s27 + $0x60] sm:$0xff] %v403_v12  ;;  %406 = vst [vmem:[%s5539_s27 + $0x68] sm:$0xff] %v405_v13  ;;  %v409_v15 = vld [vmem:[%s5534_s26 + $0xf0] sm:$0xff] }
  0x1e   : > { %408 = vst [vmem:[%s5539_s27 + $0x70] sm:$0xff] %v407_v14  ;;  %v411_v16 = vld [vmem:[%s5534_s26 + $0x100] sm:$0xff]  ;;  %v413_v17 = vld [vmem:[%s5534_s26 + $0x110] sm:$0xff]  ;;  %410 = vst [vmem:[%s5539_s27 + $0x78] sm:$0xff] %v409_v15 }
  0x1f   : > { %412 = vst [vmem:[%s5539_s27 + $0x80] sm:$0xff] %v411_v16  ;;  %414 = vst [vmem:[%s5539_s27 + $0x88] sm:$0xff] %v413_v17  ;;  %v415_v18 = vld [vmem:[%s5534_s26 + $0x120] sm:$0xff]  ;;  %v417_v19 = vld [vmem:[%s5534_s26 + $0x130] sm:$0xff] }
  0x20   : > { %v419_v20 = vld [vmem:[%s5534_s26 + $0x140] sm:$0xff]  ;;  %416 = vst [vmem:[%s5539_s27 + $0x90] sm:$0xff] %v415_v18  ;;  %418 = vst [vmem:[%s5539_s27 + $0x98] sm:$0xff] %v417_v19  ;;  %v421_v21 = vld [vmem:[%s5534_s26 + $0x150] sm:$0xff] }
  0x21   : > { %420 = vst [vmem:[%s5539_s27 + $0xa0] sm:$0xff] %v419_v20  ;;  %v423_v22 = vld [vmem:[%s5534_s26 + $0x160] sm:$0xff]  ;;  %v425_v23 = vld [vmem:[%s5534_s26 + $0x170] sm:$0xff]  ;;  %422 = vst [vmem:[%s5539_s27 + $0xa8] sm:$0xff] %v421_v21 }
  0x22   : > { %424 = vst [vmem:[%s5539_s27 + $0xb0] sm:$0xff] %v423_v22  ;;  %426 = vst [vmem:[%s5539_s27 + $0xb8] sm:$0xff] %v425_v23  ;;  %v427_v24 = vld [vmem:[%s5534_s26 + $0x180] sm:$0xff]  ;;  %v429_v25 = vld [vmem:[%s5534_s26 + $0x190] sm:$0xff] }
  0x23   : > { %v431_v26 = vld [vmem:[%s5534_s26 + $0x1a0] sm:$0xff]  ;;  %428 = vst [vmem:[%s5539_s27 + $0xc0] sm:$0xff] %v427_v24  ;;  %430 = vst [vmem:[%s5539_s27 + $0xc8] sm:$0xff] %v429_v25  ;;  %v433_v27 = vld [vmem:[%s5534_s26 + $0x1b0] sm:$0xff] }
  0x24   : > { %432 = vst [vmem:[%s5539_s27 + $0xd0] sm:$0xff] %v431_v26  ;;  %v435_v28 = vld [vmem:[%s5534_s26 + $0x1c0] sm:$0xff]  ;;  %v437_v29 = vld [vmem:[%s5534_s26 + $0x1d0] sm:$0xff]  ;;  %434 = vst [vmem:[%s5539_s27 + $0xd8] sm:$0xff] %v433_v27 }
  0x25   : > { %436 = vst [vmem:[%s5539_s27 + $0xe0] sm:$0xff] %v435_v28  ;;  %438 = vst [vmem:[%s5539_s27 + $0xe8] sm:$0xff] %v437_v29  ;;  %v439_v30 = vld [vmem:[%s5534_s26 + $0x1e0] sm:$0xff]  ;;  %v441_v31 = vld [vmem:[%s5534_s26 + $0x1f0] sm:$0xff] }
  0x26   : > { %440 = vst [vmem:[%s5539_s27 + $0xf0] sm:$0xff] %v439_v30  ;;  %442 = vst [vmem:[%s5539_s27 + $0xf8] sm:$0xff] %v441_v31 }
  0x27 PF: > { %p4071_p10 = scmp.ge.s32.totalorder %s5424_s12, 1  ;;  %p447_p11 = scmp.lt.s32.totalorder %s5424_s12, 3 }
  0x29   : > { %p448_p12 = pnand %p4071_p10, %p447_p11 }
  0x2a   : > { %v5031_v32 = vld [vmem:[%s6778_s1 + $0x4] ss:$8 sps:$4 sm:$0xff] (!%p448_p12)   ;;  %s5608_s14 = sand.u32 (!%p448_p12), 1, %s5416_s10   ;;  %v5033_v33 = vld [vmem:[%s6778_s1] ss:$8 sps:$4 sm:$0xff] (!%p448_p12)   ;;  %v5426_v34 = vmov (!%p448_p12), 0  }
  0x2b   : > { %451 = sbr.rel (%p448_p12) target bundleno = 2302 (0x8fe), region = 90  ;;  %636 = vmatprep.mubr.bf16.mxu0 (!%p448_p12), %v5426_v34  ;;  %s4072_s21 = sshll.u32 (!%p448_p12), %s5608_s14, 8  ;;  %696 = vmatprep.mubr.bf16.mxu1 (!%p448_p12), %v5426_v34  ;;  %v5034_v35 = vld [vmem:[%s6778_s1 + $0x14] ss:$8 sps:$4 sm:$0xff] (!%p448_p12)   ;;  %v5036_v36 = vld [vmem:[%s6778_s1 + $0x10] ss:$8 sps:$4 sm:$0xff] (!%p448_p12)  }
  0x2c   : > { %604 = vmatprep.subr.bf16.mxu0 (!%p448_p12), %v5031_v32  ;;  %4588 = vmatprep.subr.bf16.mxu1 (!%p448_p12), %v5031_v32  ;;  %s5622_s26 = scalar_lea.vmem (!%p448_p12), [#allocation2], %s4072_s21  ;;  %v5039_v39 = vld [vmem:[%s6778_s1 + $0x24] ss:$8 sps:$4 sm:$0xff] (!%p448_p12)   ;;  %vm561_vm0 = vcmask (!%p448_p12), 261120   ;;  %v5037_v41 = vld [vmem:[%s6778_s1 + $0x20] ss:$8 sps:$4 sm:$0xff] (!%p448_p12)  }
  0x2d   : > { %605 = vmatpush1.bf16.msra.mxu0 (!%p448_p12), %v5033_v33  ;;  %v490_v37 = vld [vmem:[%s5622_s26] sm:$0xff] (!%p448_p12)  ;;  %v491_v38 = vld [vmem:[%s5622_s26 + $0x8] sm:$0xff] (!%p448_p12)  ;;  %4590 = vmatpush1.bf16.msra.mxu1 (!%p448_p12), %v5033_v33  ;;  %v5042_v42 = vld [vmem:[%s6778_s1 + $0x34] ss:$8 sps:$4 sm:$0xff] (!%p448_p12)   ;;  %vm2132_vm1 = vcmask (!%p448_p12), 1043456   ;;  %vm2110_vm2 = vcmask (!%p448_p12), 326656  }
  0x2e   : > { %606 = vmatprep.subr.bf16.mxu0 (!%p448_p12), %v5034_v35  ;;  %4589 = vmatprep.subr.bf16.mxu1 (!%p448_p12), %v5034_v35  ;;  %v527_v40 = vpack.c.bf16 (!%p448_p12), %v491_v38, %v490_v37  ;;  %v492_v43 = vld [vmem:[%s5622_s26 + $0x10] sm:$0xff] (!%p448_p12)  ;;  %v493_v44 = vld [vmem:[%s5622_s26 + $0x18] sm:$0xff] (!%p448_p12)  ;;  %v5045_v46 = vld [vmem:[%s6778_s1 + $0x44] ss:$8 sps:$4 sm:$0xff] (!%p448_p12)   ;;  %vm2314_vm3 = vcmask (!%p448_p12), 1041408   ;;  %vm2298_vm4 = vcmask (!%p448_p12), 687104  }
  0x2f   : > { %v5040_v45 = vld [vmem:[%s6778_s1 + $0x30] ss:$8 sps:$4 sm:$0xff] (!%p448_p12)   ;;  %v5646_v47 = vpack.c.bf16 (!%p448_p12), %v493_v44, %v492_v43  ;;  %v494_v48 = vld [vmem:[%s5622_s26 + $0x20] sm:$0xff] (!%p448_p12)  ;;  %v495_v49 = vld [vmem:[%s5622_s26 + $0x28] sm:$0xff] (!%p448_p12)  ;;  %v849_v61 = vpack.c.bf16 (!%p448_p12), %v492_v43, %v491_v38  ;;  %vm5428_vm5 = vmmov (!%p448_p12), 0   ;;  %vm3394_vm6 = vcmask (!%p448_p12), 654336  }
  0x30   : > { %v5653_v50 = vpack.c.bf16 (!%p448_p12), %v495_v49, %v494_v48  ;;  %v496_v51 = vld [vmem:[%s5622_s26 + $0x30] sm:$0xff] (!%p448_p12)  ;;  %v497_v52 = vld [vmem:[%s5622_s26 + $0x38] sm:$0xff] (!%p448_p12)  ;;  %v498_v54 = vld [vmem:[%s5622_s26 + $0x40] sm:$0xff] (!%p448_p12)  ;;  %v5693_v1 = vpack.c.bf16 (!%p448_p12), %v494_v48, %v493_v44  ;;  %vm3846_vm7 = vcmask (!%p448_p12), 982016   ;;  %s4073_s27 = sshll.u32 (!%p448_p12), %s5608_s14, 3  ;;  %s4433_s29 = sshll.u32 (!%p448_p12), %s4065_s13, 7 }
  0x31   : > { %607 = vmatpush1.bf16.msra.mxu0 (!%p448_p12), %v5036_v36  ;;  %4591 = vmatpush1.bf16.msra.mxu1 (!%p448_p12), %v5036_v36  ;;  %v5660_v53 = vpack.c.bf16 (!%p448_p12), %v497_v52, %v496_v51  ;;  %v499_v55 = vld [vmem:[%s5622_s26 + $0x48] sm:$0xff] (!%p448_p12)  ;;  %v500_v57 = vld [vmem:[%s5622_s26 + $0x50] sm:$0xff] (!%p448_p12)  ;;  %v501_v58 = vld [vmem:[%s5622_s26 + $0x58] sm:$0xff] (!%p448_p12)  ;;  %v5698_v2 = vpack.c.bf16 (!%p448_p12), %v496_v51, %v495_v49  ;;  %v5709_v6 = vpack.c.bf16 (!%p448_p12), %v498_v54, %v497_v52  ;;  %s488_s16 = scalar_lea.vmem (!%p448_p12), [#allocation3], %s4073_s27  ;;  %s6733_s23 = scalar_lea.hbm (!%p448_p12), %s6786_s9, %s4433_s29 }
  0x32   : > { %925 = vmatprep.subr.bf16.mxu0 %v5039_v39  ;;  %2136 = vmatprep.subr.bf16.mxu1 %v5426_v34  ;;  %v5667_v56 = vpack.c.bf16 %v499_v55, %v498_v54  ;;  %v5674_v59 = vpack.c.bf16 %v501_v58, %v500_v57  ;;  %v5043_v60 = vld [vmem:[%s6778_s1 + $0x40] ss:$8 sps:$4 sm:$0xff]   ;;  %v5048_v62 = vld [vmem:[%s6778_s1 + $0x54] ss:$8 sps:$4 sm:$0xff]   ;;  %v5046_v63 = vld [vmem:[%s6778_s1 + $0x50] ss:$8 sps:$4 sm:$0xff]   ;;  %v5721_v10 = vpack.c.bf16 %v500_v57, %v499_v55 }
  0x33   : > { %v5051_v0 = vld [vmem:[%s6778_s1 + $0x64] ss:$8 sps:$4 sm:$0xff]   ;;  %v504_v7 = vld [vmem:[%s5622_s26 + $0x70] sm:$0xff]  ;;  %v505_v8 = vld [vmem:[%s5622_s26 + $0x78] sm:$0xff]  ;;  %s4001_s17 = sshll.u32 %s488_s16, 4  ;;  %s3988_s24 = scalar_lea.sflag [#allocation4], %s5608_s14  ;;  %s6735_s17 = int_to_ptr.vmem [resolvable:$true] %s4001_s17 }
  0x34   : > { %4078 = vmatmul.mubr.msk.bf16.vlgmr.msra.gmra.mrb[0].mxu0 %vm561_vm0, %v527_v40  ;;  %v502_v3 = vld [vmem:[%s5622_s26 + $0x60] sm:$0xff]  ;;  %v503_v4 = vld [vmem:[%s5622_s26 + $0x68] sm:$0xff]  ;;  %v5717_v9 = vpack.c.bf16 %v505_v8, %v504_v7  ;;  %v508_v15 = vld [vmem:[%s5622_s26 + $0x90] sm:$0xff]  ;;  %s5362_s13 = scalar_lea.vmem %s6735_s17, 128  ;;  %s5429_s25 = smov [#allocation3]  }
  0x35   : > { %926 = vmatpush1.bf16.msra.mxu0 %v5037_v41  ;;  %646 = vmatprep.mubr.bf16.mxu0 %v5426_v34  ;;  %v5705_v5 = vpack.c.bf16 %v503_v4, %v502_v3  ;;  %v506_v11 = vld [vmem:[%s5622_s26 + $0x80] sm:$0xff]  ;;  %v507_v12 = vld [vmem:[%s5622_s26 + $0x88] sm:$0xff]  ;;  %v5733_v14 = vpack.c.bf16 %v502_v3, %v501_v58  ;;  %v509_v16 = vld [vmem:[%s5622_s26 + $0x98] sm:$0xff]  ;;  %v5745_v18 = vpack.c.bf16 %v504_v7, %v503_v4  ;;  %p5363_p13 = scmp.ne.s32.totalorder %s6735_s17, %s5362_s13  ;;  %s5366_s27 = sshll.u32 %s5429_s25, 4  ;;  %s5367_s27 = int_to_ptr.vmem [resolvable:$false] %s5366_s27 }
  0x36   : > { %927 = vmatprep.subr.bf16.mxu0 %v5042_v42  ;;  %v5729_v13 = vpack.c.bf16 %v507_v12, %v506_v11  ;;  %v5741_v17 = vpack.c.bf16 %v509_v16, %v508_v15  ;;  %v510_v19 = vld [vmem:[%s5622_s26 + $0xa0] sm:$0xff]  ;;  %v511_v20 = vld [vmem:[%s5622_s26 + $0xa8] sm:$0xff]  ;;  %v5757_v22 = vpack.c.bf16 %v506_v11, %v505_v8  ;;  %v512_v23 = vld [vmem:[%s5622_s26 + $0xb0] sm:$0xff]  ;;  %v5769_v26 = vpack.c.bf16 %v508_v15, %v507_v12  ;;  %s5368_s28 = scalar_lea.vmem %s5367_s27, 256  ;;  %p5369_p2 = scmp.lt.s32.totalorder %s6735_s17, %s5367_s27 }
  0x37   : > { %4084 = vmatmul.mubr.msk.bf16.vlgmr.msra.gmra.mrb[0].mxu1 %vm561_vm0, %v5705_v5  ;;  %v5753_v21 = vpack.c.bf16 %v511_v20, %v510_v19  ;;  %v513_v24 = vld [vmem:[%s5622_s26 + $0xb8] sm:$0xff]  ;;  %v514_v27 = vld [vmem:[%s5622_s26 + $0xc0] sm:$0xff]  ;;  %v515_v28 = vld [vmem:[%s5622_s26 + $0xc8] sm:$0xff]  ;;  %v5781_v30 = vpack.c.bf16 %v510_v19, %v509_v16  ;;  %v5793_v35 = vpack.c.bf16 %v512_v23, %v511_v20  ;;  %p5364_p0 = pnand %p5363_p13, %p5518_p6  ;;  %p5370_p3 = scmp.lt.s32.totalorder %s5368_s28, %s5362_s13 }
  0x38   : > { %706 = vmatprep.mubr.bf16.mxu1 %v5426_v34  ;;  %v5765_v25 = vpack.c.bf16 %v513_v24, %v512_v23  ;;  %v5777_v29 = vpack.c.bf16 %v515_v28, %v514_v27  ;;  %v516_v31 = vld [vmem:[%s5622_s26 + $0xd0] sm:$0xff]  ;;  %v517_v32 = vld [vmem:[%s5622_s26 + $0xd8] sm:$0xff]  ;;  %v5798_v36 = vpack.c.bf16 %v514_v27, %v513_v24  ;;  %v518_v38 = vld [vmem:[%s5622_s26 + $0xe0] sm:$0xff] }
  0x39   : > { %928 = vmatpush1.bf16.msra.mxu0 %v5040_v45  ;;  %v5789_v33 = vpack.c.bf16 %v517_v32, %v516_v31  ;;  %v5803_v37 = vpack.c.bf16 %v516_v31, %v515_v28  ;;  %v5809_v39 = vpack.c.bf16 %v518_v38, %v517_v32  ;;  %v5049_v40 = vld [vmem:[%s6778_s1 + $0x60] ss:$8 sps:$4 sm:$0xff]   ;;  %v5054_v41 = vld [vmem:[%s6778_s1 + $0x74] ss:$8 sps:$4 sm:$0xff]   ;;  %v5052_v42 = vld [vmem:[%s6778_s1 + $0x70] ss:$8 sps:$4 sm:$0xff]   ;;  %p5365_p1 = pneg %p5364_p0  ;;  %p5371_p4 = por %p5370_p3, %p5369_p2 }
  0x3a   : > { %1183 = vmatprep.subr.bf16.mxu0 %v5045_v46  ;;  %v5057_v43 = vld [vmem:[%s6778_s1 + $0x84] ss:$8 sps:$4 sm:$0xff]   ;;  %v5055_v46 = vld [vmem:[%s6778_s1 + $0x80] ss:$8 sps:$4 sm:$0xff]   ;;  %v5058_v48 = vld [vmem:[%s6778_s1 + $0x90] ss:$8 sps:$4 sm:$0xff]  }
  0x3b   : > { %v519_v44 = vld [vmem:[%s5622_s26 + $0xe8] sm:$0xff]  ;;  %v5061_v49 = vld [vmem:[%s6779_s2] sm:$0xff]   ;;  %v5063_v52 = vld [vmem:[%s6779_s2 + $0x10] sm:$0xff]   ;;  %p5372_p5 = pnand %p5371_p4, %p5365_p1 }
  0x3c   : > { %4079 = vmatmul.mubr.msk.bf16.gmra.mrb[4].mxu0 %vm561_vm0, %v5646_v47  ;;  %v5866_v45 = vpack.c.bf16 %v519_v44, %v518_v38  ;;  %2137 = vmatpush1.bf16.msra.mxu1 %v5061_v49  ;;  %v5062_v51 = vld [vmem:[%s6779_s2 + $0x8] sm:$0xff]   ;;  %v520_v54 = vld [vmem:[%s5622_s26 + $0xf0] sm:$0xff]  ;;  %v5064_v55 = vld [vmem:[%s6779_s2 + $0x18] sm:$0xff]  }
  0x3d   : > { %656 = vmatprep.mubr.bf16.mxu0 %v5426_v34  ;;  %2138 = vmatprep.subr.bf16.mxu1 %v5426_v34  ;;  %v1417_v57 = vpack.c.bf16 %v520_v54, %v519_v44  ;;  %v5068_v58 = vld [vmem:[%s6779_s2 + $0x38] sm:$0xff]  }
  0x3f   : > { %4085 = vmatmul.mubr.msk.bf16.gmra.mrb[4].mxu1 %vm561_vm0, %v5717_v9 }
  0x40   : > { %716 = vmatprep.mubr.bf16.mxu1 %v5426_v34  ;;  %2139 = vmatpush1.bf16.msra.mxu1 %v5062_v51 }
  0x41   : > { %2140 = vmatprep.subr.bf16.mxu1 %v5426_v34 }
  0x44   : > { %4080 = vmatmul.mubr.msk.bf16.gmra.mrb[8].mxu0 %vm561_vm0, %v5653_v50  ;;  %2141 = vmatpush1.bf16.msra.mxu1 %v5063_v52 }
  0x45   : > { %666 = vmatprep.mubr.bf16.mxu0 %v5426_v34  ;;  %2142 = vmatprep.subr.bf16.mxu1 %v5426_v34 }
  0x47   : > { %4086 = vmatmul.mubr.msk.bf16.gmra.mrb[8].mxu1 %vm561_vm0, %v5729_v13 }
  0x48   : > { %726 = vmatprep.mubr.bf16.mxu1 %v5426_v34  ;;  %2143 = vmatpush1.bf16.msra.mxu1 %v5064_v55 }
  0x49   : > { %2144 = vmatprep.subr.bf16.mxu1 %v5426_v34 }
  0x4c   : > { %4081 = vmatmul.mubr.msk.bf16.gmra.mrb[12].mxu0 %vm561_vm0, %v5660_v53 }
  0x4d   : > { %676 = vmatprep.mubr.bf16.mxu0 %v5426_v34 }
  0x4f   : > { %4087 = vmatmul.mubr.msk.bf16.gmra.mrb[12].mxu1 %vm561_vm0, %v5741_v17 }
  0x50   : > { %736 = vmatprep.mubr.bf16.mxu1 %v5426_v34 }
  0x54   : > { %4082 = vmatmul.mubr.msk.bf16.gmra.mrb[16].mxu0 %vm561_vm0, %v5667_v56 }
  0x55   : > { %686 = vmatprep.mubr.bf16.mxu0 %v5426_v34 }
  0x57   : > { %4088 = vmatmul.mubr.msk.bf16.gmra.mrb[16].mxu1 %vm561_vm0, %v5753_v21 }
  0x58   : > { %746 = vmatprep.mubr.bf16.mxu1 %v5426_v34 }
  0x5c   : > { %4083 = vmatmul.mubr.msk.bf16.gmra.mrb[20].mxu0 %vm561_vm0, %v5674_v59 }
  0x5d   : > { %957 = vmatprep.mubr.bf16.mxu0 %v5426_v34 }
  0x5f   : > { %4089 = vmatmul.mubr.msk.bf16.gmra.mrb[20].mxu1 %vm561_vm0, %v5765_v25 }
  0x60   : > { %756 = vmatprep.mubr.bf16.mxu1 %v5426_v34 }
  0x64   : > { %4100 = vmatmul.mubr.msk.bf16.vlgmr.msra.gmra.mrb[0].mxu0 %vm561_vm0, %v849_v61  ;;  %v5069_v61 = vld [vmem:[%s6779_s2 + $0x40] sm:$0xff]  }
  0x65   : > { %1184 = vmatpush1.bf16.msra.mxu0 %v5043_v60  ;;  %967 = vmatprep.mubr.bf16.mxu0 %v5426_v34 }
  0x66   : > { %1185 = vmatprep.subr.bf16.mxu0 %v5048_v62  ;;  %v5070_v62 = vld [vmem:[%s6779_s2 + $0x48] sm:$0xff]  }
  0x67   : > { %4090 = vmatmul.mubr.msk.bf16.gmra.mrb[24].mxu1 %vm561_vm0, %v5777_v29 }
  0x68   : > { %766 = vmatprep.mubr.bf16.mxu1 %v5426_v34 }
  0x69   : > { %1186 = vmatpush1.bf16.msra.mxu0 %v5046_v63  ;;  %v5071_v63 = vld [vmem:[%s6779_s2 + $0x50] ss:$0 sps:$4 sm:$0xff]  }
  0x6a   : > { %1441 = vmatprep.subr.bf16.mxu0 %v5051_v0  ;;  %v2134_v0 = vsel %vm2132_vm1, %v5071_v63, 0 }
  0x6c   : > { %4101 = vmatmul.mubr.msk.bf16.gmra.mrb[4].mxu0 %vm561_vm0, %v5693_v1 }
  0x6d   : > { %977 = vmatprep.mubr.bf16.mxu0 %v5426_v34 }
  0x6f   : > { %4091 = vmatmul.mubr.msk.bf16.gmra.mrb[28].mxu1 %vm561_vm0, %v5789_v33 }
  0x74   : > { %4102 = vmatmul.mubr.msk.bf16.gmra.mrb[8].mxu0 %vm561_vm0, %v5698_v2 }
  0x75   : > { %987 = vmatprep.mubr.bf16.mxu0 %v5426_v34 }
  0x7c   : > { %4103 = vmatmul.mubr.msk.bf16.gmra.mrb[12].mxu0 %vm561_vm0, %v5709_v6 }
  0x7d   : > { %997 = vmatprep.mubr.bf16.mxu0 %v5426_v34 }
  0x84   : > { %4104 = vmatmul.mubr.msk.bf16.gmra.mrb[16].mxu0 %vm561_vm0, %v5721_v10 }
  0x85   : > { %1007 = vmatprep.mubr.bf16.mxu0 %v5426_v34 }
  0x8c   : > { %4105 = vmatmul.mubr.msk.bf16.gmra.mrb[20].mxu0 %vm561_vm0, %v5733_v14 }
  0x8d   : > { %1017 = vmatprep.mubr.bf16.mxu0 %v5426_v34 }
  0x94   : > { %4106 = vmatmul.mubr.msk.bf16.gmra.mrb[24].mxu0 %vm561_vm0, %v5745_v18 }
  0x95   : > { %1027 = vmatprep.mubr.bf16.mxu0 %v5426_v34 }
  0x9c   : > { %4107 = vmatmul.mubr.msk.bf16.gmra.mrb[28].mxu0 %vm561_vm0, %v5757_v22 }
  0x9d   : > { %1037 = vmatprep.mubr.bf16.mxu0 %v5426_v34 }
  0xa4   : > { %4108 = vmatmul.mubr.msk.bf16.gmra.mrb[32].mxu0 %vm561_vm0, %v5769_v26 }
  0xa5   : > { %1047 = vmatprep.mubr.bf16.mxu0 %v5426_v34 }
  0xac   : > { %4109 = vmatmul.mubr.msk.bf16.gmra.mrb[36].mxu0 %vm561_vm0, %v5781_v30 }
  0xad   : > { %1057 = vmatprep.mubr.bf16.mxu0 %v5426_v34 }
  0xb4   : > { %4110 = vmatmul.mubr.msk.bf16.gmra.mrb[40].mxu0 %vm561_vm0, %v5793_v35 }
  0xb5   : > { %1067 = vmatprep.mubr.bf16.mxu0 %v5426_v34 }
  0xbc   : > { %4111 = vmatmul.mubr.msk.bf16.gmra.mrb[44].mxu0 %vm561_vm0, %v5798_v36 }
  0xbd   : > { %1077 = vmatprep.mubr.bf16.mxu0 %v5426_v34 }
  0xc4   : > { %4112 = vmatmul.mubr.msk.bf16.gmra.mrb[48].mxu0 %vm561_vm0, %v5803_v37 }
  0xc5   : > { %1087 = vmatprep.mubr.bf16.mxu0 %v5426_v34 }
  0xcc   : > { %4113 = vmatmul.mubr.msk.bf16.gmra.mrb[52].mxu0 %vm561_vm0, %v5809_v39 }
  0xcd   : > { %1215 = vmatprep.mubr.bf16.mxu0 %v5426_v34 }
  0xd4   : > { %4122 = vmatmul.mubr.msk.bf16.vlgmr.msra.gmra.mrb[0].mxu0 %vm561_vm0, %v5646_v47  ;;  %v5060_v47 = vld [vmem:[%s6778_s1 + $0x94] ss:$8 sps:$4 sm:$0xff]  }
  0xd5   : > { %1442 = vmatpush1.bf16.msra.mxu0 %v5049_v40  ;;  %1225 = vmatprep.mubr.bf16.mxu0 %v5426_v34 }
  0xd6   : > { %1443 = vmatprep.subr.bf16.mxu0 %v5054_v41  ;;  %v5074_v41 = vld [vmem:[%s6780_s3 + $0x4] ss:$8 sps:$4 sm:$0xff]  }
  0xd9   : > { %1444 = vmatpush1.bf16.msra.mxu0 %v5052_v42 }
  0xda   : > { %1699 = vmatprep.subr.bf16.mxu0 %v5057_v43 }
  0xdc   : > { %4123 = vmatmul.mubr.msk.bf16.gmra.mrb[4].mxu0 %vm561_vm0, %v5653_v50 }
  0xdd   : > { %1235 = vmatprep.mubr.bf16.mxu0 %v5426_v34 }
  0xe4   : > { %4124 = vmatmul.mubr.msk.bf16.gmra.mrb[8].mxu0 %vm561_vm0, %v5660_v53 }
  0xe5   : > { %1245 = vmatprep.mubr.bf16.mxu0 %v5426_v34 }
  0xec   : > { %4125 = vmatmul.mubr.msk.bf16.gmra.mrb[12].mxu0 %vm561_vm0, %v5667_v56 }
  0xed   : > { %1255 = vmatprep.mubr.bf16.mxu0 %v5426_v34 }
  0xf4   : > { %4126 = vmatmul.mubr.msk.bf16.gmra.mrb[16].mxu0 %vm561_vm0, %v5674_v59 }
  0xf5   : > { %1265 = vmatprep.mubr.bf16.mxu0 %v5426_v34 }
  0xfc   : > { %4127 = vmatmul.mubr.msk.bf16.gmra.mrb[20].mxu0 %vm561_vm0, %v5705_v5 }
  0xfd   : > { %1275 = vmatprep.mubr.bf16.mxu0 %v5426_v34 }
 0x104   : > { %4128 = vmatmul.mubr.msk.bf16.gmra.mrb[24].mxu0 %vm561_vm0, %v5717_v9 }
 0x105   : > { %1285 = vmatprep.mubr.bf16.mxu0 %v5426_v34 }
 0x10c   : > { %4129 = vmatmul.mubr.msk.bf16.gmra.mrb[28].mxu0 %vm561_vm0, %v5729_v13 }
 0x10d   : > { %1295 = vmatprep.mubr.bf16.mxu0 %v5426_v34 }
 0x114   : > { %4130 = vmatmul.mubr.msk.bf16.gmra.mrb[32].mxu0 %vm561_vm0, %v5741_v17 }
 0x115   : > { %1305 = vmatprep.mubr.bf16.mxu0 %v5426_v34 }
 0x11c   : > { %4131 = vmatmul.mubr.msk.bf16.gmra.mrb[36].mxu0 %vm561_vm0, %v5753_v21 }
 0x11d   : > { %1315 = vmatprep.mubr.bf16.mxu0 %v5426_v34 }
 0x124   : > { %4132 = vmatmul.mubr.msk.bf16.gmra.mrb[40].mxu0 %vm561_vm0, %v5765_v25 }
 0x125   : > { %1325 = vmatprep.mubr.bf16.mxu0 %v5426_v34 }
 0x12c   : > { %4133 = vmatmul.mubr.msk.bf16.gmra.mrb[44].mxu0 %vm561_vm0, %v5777_v29 }
 0x12d   : > { %1335 = vmatprep.mubr.bf16.mxu0 %v5426_v34 }
 0x134   : > { %4134 = vmatmul.mubr.msk.bf16.gmra.mrb[48].mxu0 %vm561_vm0, %v5789_v33 }
 0x135   : > { %1345 = vmatprep.mubr.bf16.mxu0 %v5426_v34 }
 0x13c   : > { %4135 = vmatmul.mubr.msk.bf16.gmra.mrb[52].mxu0 %vm561_vm0, %v5866_v45 }
 0x13d   : > { %1473 = vmatprep.mubr.bf16.mxu0 %v5426_v34 }
 0x144   : > { %4144 = vmatmul.mubr.msk.bf16.vlgmr.msra.gmra.mrb[0].mxu0 %vm561_vm0, %v5693_v1  ;;  %v6007_v1 = vpop.f32.mrb[0].mxu1 }
 0x145   : > { %1700 = vmatpush1.bf16.msra.mxu0 %v5055_v46  ;;  %1483 = vmatprep.mubr.bf16.mxu0 %v5426_v34 }
 0x146   : > { %1701 = vmatprep.subr.bf16.mxu0 %v5060_v47 }
 0x149   : > { %1702 = vmatpush1.bf16.msra.mxu0 %v5058_v48 }
 0x14c   : > { %4145 = vmatmul.mubr.msk.bf16.gmra.mrb[4].mxu0 %vm561_vm0, %v5698_v2  ;;  %v6009_v2 = vpop.f32.mrb[1].mxu1 }
 0x14d   : > { %1493 = vmatprep.mubr.bf16.mxu0 %v5426_v34  ;;  %v6011_v3 = vpop.f32.mrb[2].mxu1 }
 0x14e   : > { %v6013_v4 = vpop.f32.mrb[3].mxu1 }
 0x154   : > { %4146 = vmatmul.mubr.msk.bf16.gmra.mrb[8].mxu0 %vm561_vm0, %v5709_v6 }
 0x155   : > { %1503 = vmatprep.mubr.bf16.mxu0 %v5426_v34 }
 0x15c   : > { %4147 = vmatmul.mubr.msk.bf16.gmra.mrb[12].mxu0 %vm561_vm0, %v5721_v10 }
 0x15d   : > { %1513 = vmatprep.mubr.bf16.mxu0 %v5426_v34 }
 0x164   : > { %4148 = vmatmul.mubr.msk.bf16.gmra.mrb[16].mxu0 %vm561_vm0, %v5733_v14 }
 0x165   : > { %1523 = vmatprep.mubr.bf16.mxu0 %v5426_v34 }
 0x16c   : > { %4149 = vmatmul.mubr.msk.bf16.gmra.mrb[20].mxu0 %vm561_vm0, %v5745_v18 }
 0x16d   : > { %1533 = vmatprep.mubr.bf16.mxu0 %v5426_v34 }
 0x174   : > { %4150 = vmatmul.mubr.msk.bf16.gmra.mrb[24].mxu0 %vm561_vm0, %v5757_v22 }
 0x175   : > { %1543 = vmatprep.mubr.bf16.mxu0 %v5426_v34 }
 0x17c   : > { %4151 = vmatmul.mubr.msk.bf16.gmra.mrb[28].mxu0 %vm561_vm0, %v5769_v26 }
 0x17d   : > { %1553 = vmatprep.mubr.bf16.mxu0 %v5426_v34 }
 0x184   : > { %4152 = vmatmul.mubr.msk.bf16.gmra.mrb[32].mxu0 %vm561_vm0, %v5781_v30 }
 0x185   : > { %1563 = vmatprep.mubr.bf16.mxu0 %v5426_v34 }
 0x18c   : > { %4153 = vmatmul.mubr.msk.bf16.gmra.mrb[36].mxu0 %vm561_vm0, %v5793_v35 }
 0x18d   : > { %1573 = vmatprep.mubr.bf16.mxu0 %v5426_v34 }
 0x194   : > { %4154 = vmatmul.mubr.msk.bf16.gmra.mrb[40].mxu0 %vm561_vm0, %v5798_v36 }
 0x195   : > { %1583 = vmatprep.mubr.bf16.mxu0 %v5426_v34 }
 0x19c   : > { %4155 = vmatmul.mubr.msk.bf16.gmra.mrb[44].mxu0 %vm561_vm0, %v5803_v37  ;;  %v522_v37 = vld [vmem:[%s6785_s8] ss:$8 sm:$0x3] }
 0x19d   : > { %1593 = vmatprep.mubr.bf16.mxu0 %v5426_v34 }
 0x1a4   : > { %4156 = vmatmul.mubr.msk.bf16.gmra.mrb[48].mxu0 %vm561_vm0, %v5809_v39 }
 0x1a5   : > { %1603 = vmatprep.mubr.bf16.mxu0 %v5426_v34 }
 0x1ac   : > { %4157 = vmatmul.mubr.msk.bf16.gmra.mrb[52].mxu0 %vm561_vm0, %v1417_v57 }
 0x1ad   : > { %1731 = vmatprep.mubr.bf16.mxu0 %v5426_v34 }
 0x1b4   : > { %4166 = vmatmul.mubr.msk.bf16.vlgmr.msra.gmra.mrb[0].mxu0 %vm561_vm0, %v5653_v50  ;;  %v5065_v50 = vld [vmem:[%s6779_s2 + $0x20] sm:$0xff]  }
 0x1b5   : > { %1741 = vmatprep.mubr.bf16.mxu0 %v5426_v34  ;;  %2145 = vmatpush1.bf16.msra.mxu1 %v5065_v50 }
 0x1b6   : > { %2146 = vmatprep.subr.bf16.mxu1 %v5426_v34 }
 0x1bc   : > { %4167 = vmatmul.mubr.msk.bf16.gmra.mrb[4].mxu0 %vm561_vm0, %v5660_v53  ;;  %v5066_v53 = vld [vmem:[%s6779_s2 + $0x28] sm:$0xff]  }
 0x1bd   : > { %1751 = vmatprep.mubr.bf16.mxu0 %v5426_v34  ;;  %2147 = vmatpush1.bf16.msra.mxu1 %v5066_v53 }
 0x1be   : > { %2148 = vmatprep.subr.bf16.mxu1 %v5426_v34 }
 0x1c4   : > { %4168 = vmatmul.mubr.msk.bf16.gmra.mrb[8].mxu0 %vm561_vm0, %v5667_v56  ;;  %v5067_v56 = vld [vmem:[%s6779_s2 + $0x30] sm:$0xff]  }
 0x1c5   : > { %1761 = vmatprep.mubr.bf16.mxu0 %v5426_v34  ;;  %2149 = vmatpush1.bf16.msra.mxu1 %v5067_v56 }
 0x1c6   : > { %2150 = vmatprep.subr.bf16.mxu1 %v5426_v34 }
 0x1c9   : > { %2151 = vmatpush1.bf16.msra.mxu1 %v5068_v58 }
 0x1ca   : > { %2152 = vmatprep.subr.bf16.mxu1 %v5426_v34 }
 0x1cc   : > { %4169 = vmatmul.mubr.msk.bf16.gmra.mrb[12].mxu0 %vm561_vm0, %v5674_v59  ;;  %v521_v59 = vld [vmem:[%s5622_s26 + $0xf8] sm:$0xff] }
 0x1cd   : > { %1771 = vmatprep.mubr.bf16.mxu0 %v5426_v34  ;;  %v1675_v60 = vpack.c.bf16 %v521_v59, %v520_v54  ;;  %2153 = vmatpush1.bf16.msra.mxu1 %v5069_v61 }
 0x1ce   : > { %2154 = vmatprep.subr.bf16.mxu1 %v5426_v34 }
 0x1d1   : > { %2155 = vmatpush1.bf16.msra.mxu1 %v5070_v62 }
 0x1d2   : > { %2156 = vmatprep.subr.bf16.mxu1 %v5426_v34 }
 0x1d4   : > { %4170 = vmatmul.mubr.msk.bf16.gmra.mrb[16].mxu0 %vm561_vm0, %v5705_v5  ;;  %v6015_v5 = vpop.f32.mrb[4].mxu1 }
 0x1d5   : > { %1781 = vmatprep.mubr.bf16.mxu0 %v5426_v34  ;;  %2157 = vmatpush1.bf16.msra.mxu1 %v2134_v0  ;;  %v6017_v6 = vpop.f32.mrb[5].mxu1 }
 0x1d6   : > { %v6019_v7 = vpop.f32.mrb[6].mxu1  ;;  %2321 = vmatprep.subr.bf16.mxu1 %v5074_v41 }
 0x1d7   : > { %v6021_v8 = vpop.f32.mrb[7].mxu1 }
 0x1dc   : > { %4171 = vmatmul.mubr.msk.bf16.gmra.mrb[20].mxu0 %vm561_vm0, %v5717_v9  ;;  %v6023_v9 = vpop.f32.mrb[8].mxu1 }
 0x1dd   : > { %1791 = vmatprep.mubr.bf16.mxu0 %v5426_v34  ;;  %v6025_v10 = vpop.f32.mrb[9].mxu1 }
 0x1de   : > { %v6027_v11 = vpop.f32.mrb[10].mxu1 }
 0x1df   : > { %v6029_v12 = vpop.f32.mrb[11].mxu1 }
 0x1e4   : > { %4172 = vmatmul.mubr.msk.bf16.gmra.mrb[24].mxu0 %vm561_vm0, %v5729_v13  ;;  %v6031_v13 = vpop.f32.mrb[12].mxu1 }
 0x1e5   : > { %1801 = vmatprep.mubr.bf16.mxu0 %v5426_v34  ;;  %v6033_v14 = vpop.f32.mrb[13].mxu1 }
 0x1e6   : > { %v6035_v15 = vpop.f32.mrb[14].mxu1 }
 0x1e7   : > { %v6037_v16 = vpop.f32.mrb[15].mxu1 }
 0x1ec   : > { %4173 = vmatmul.mubr.msk.bf16.gmra.mrb[28].mxu0 %vm561_vm0, %v5741_v17  ;;  %v6039_v17 = vpop.f32.mrb[16].mxu1 }
 0x1ed   : > { %1811 = vmatprep.mubr.bf16.mxu0 %v5426_v34  ;;  %v6041_v18 = vpop.f32.mrb[17].mxu1 }
 0x1ee   : > { %v6043_v19 = vpop.f32.mrb[18].mxu1 }
 0x1ef   : > { %v6045_v20 = vpop.f32.mrb[19].mxu1 }
 0x1f4   : > { %4174 = vmatmul.mubr.msk.bf16.gmra.mrb[32].mxu0 %vm561_vm0, %v5753_v21  ;;  %v6047_v21 = vpop.f32.mrb[20].mxu1 }
 0x1f5   : > { %1821 = vmatprep.mubr.bf16.mxu0 %v5426_v34  ;;  %v6049_v22 = vpop.f32.mrb[21].mxu1 }
 0x1f6   : > { %v6051_v23 = vpop.f32.mrb[22].mxu1 }
 0x1f7   : > { %v6053_v24 = vpop.f32.mrb[23].mxu1 }
 0x1fc   : > { %4175 = vmatmul.mubr.msk.bf16.gmra.mrb[36].mxu0 %vm561_vm0, %v5765_v25  ;;  %v6055_v25 = vpop.f32.mrb[24].mxu1 }
 0x1fd   : > { %1831 = vmatprep.mubr.bf16.mxu0 %v5426_v34  ;;  %v6057_v26 = vpop.f32.mrb[25].mxu1 }
 0x1fe   : > { %v6059_v27 = vpop.f32.mrb[26].mxu1 }
 0x1ff   : > { %v6061_v28 = vpop.f32.mrb[27].mxu1 }
 0x204   : > { %4176 = vmatmul.mubr.msk.bf16.gmra.mrb[40].mxu0 %vm561_vm0, %v5777_v29  ;;  %v6063_v29 = vpop.f32.mrb[28].mxu1 }
 0x205   : > { %1841 = vmatprep.mubr.bf16.mxu0 %v5426_v34  ;;  %v6065_v30 = vpop.f32.mrb[29].mxu1 }
 0x206   : > { %v6067_v31 = vpop.f32.mrb[30].mxu1 }
 0x207   : > { %v6069_v32 = vpop.f32.mrb[31].mxu1 }
 0x20c   : > { %4177 = vmatmul.mubr.msk.bf16.gmra.mrb[44].mxu0 %vm561_vm0, %v5789_v33  ;;  %v778_v33 = vlaneseq }
 0x20d   : > { %1851 = vmatprep.mubr.bf16.mxu0 %v5426_v34 }
 0x20e   : > { %v6071_v35 = vshrl.u32 %v778_v33, 7 }
 0x210   : > { %v780_v36 = vsub.s32 0, %v6071_v35  ;;  %v784_v38 = vsub.s32 1, %v6071_v35 }
 0x212   : > { %v6080_v39 = vrot.slane %v522_v37, %v780_v36  ;;  %v6084_v40 = vrot.slane %v522_v37, %v784_v38 }
 0x214   : > { %4178 = vmatmul.mubr.msk.bf16.gmra.mrb[48].mxu0 %vm561_vm0, %v5866_v45 }
 0x215   : > { %1861 = vmatprep.mubr.bf16.mxu0 %v5426_v34 }
 0x21c   : > { %4179 = vmatmul.mubr.msk.bf16.gmra.mrb[52].mxu0 %vm561_vm0, %v1675_v60 }
 0x287   : > { %v1733_v42 = vpop.f32.mrb[0].mxu0 }
 0x288   : > { %v4592_v43 = vadd.f32 %v1733_v42, %v6080_v39  ;;  %v1735_v44 = vpop.f32.mrb[1].mxu0 }
 0x289   : > { %v4593_v45 = vadd.f32 %v1735_v44, %v6084_v40  ;;  %v1737_v46 = vpop.f32.mrb[2].mxu0 }
 0x28a   : > { %5206 = vtanh.f32 %v4592_v43  ;;  %v4594_v47 = vadd.f32 %v1737_v46, %v6080_v39  ;;  %v1739_v48 = vpop.f32.mrb[3].mxu0 }
 0x28b   : > { %5208 = vtanh.f32 %v4593_v45  ;;  %v4595_v49 = vadd.f32 %v1739_v48, %v6084_v40 }
 0x28c   : > { %5210 = vtanh.f32 %v4594_v47 }
 0x28d   : > { %5212 = vtanh.f32 %v4595_v49 }
 0x28f   : > { %v1743_v51 = vpop.f32.mrb[4].mxu0 }
 0x290   : > { %v4596_v52 = vadd.f32 %v1743_v51, %v6080_v39  ;;  %v1745_v54 = vpop.f32.mrb[5].mxu0 }
 0x291   : > { %v4597_v55 = vadd.f32 %v1745_v54, %v6084_v40  ;;  %v1747_v57 = vpop.f32.mrb[6].mxu0 }
 0x292   : > { %5214 = vtanh.f32 %v4596_v52  ;;  %v4598_v50 = vadd.f32 %v1747_v57, %v6080_v39  ;;  %v1749_v53 = vpop.f32.mrb[7].mxu0 }
 0x293   : > { %5216 = vtanh.f32 %v4597_v55  ;;  %v4599_v56 = vadd.f32 %v1749_v53, %v6084_v40 }
 0x294   : > { %v5207_v58 = vpop.eup %5206  ;;  %5218 = vtanh.f32 %v4598_v50 }
 0x295   : > { %v5209_v59 = vpop.eup %5208  ;;  %5220 = vtanh.f32 %v4599_v56 }
 0x296   : > { %v5211_v60 = vpop.eup %5210 }
 0x297   : > { %v5213_v61 = vpop.eup %5212  ;;  %v1984_v62 = vadd.f32 %v5211_v60, %v5207_v58  ;;  %v1753_v63 = vpop.f32.mrb[8].mxu0 }
 0x298   : > { %v4600_v0 = vadd.f32 %v1753_v63, %v6080_v39  ;;  %v1755_v33 = vpop.f32.mrb[9].mxu0  ;;  %v1985_v37 = vadd.f32 %v5213_v61, %v5209_v59  ;;  %v5072_v61 = vld [vmem:[%s6780_s3] ss:$8 sps:$4 sm:$0xff]  }
 0x299   : > { %v4601_v41 = vadd.f32 %v1755_v33, %v6084_v40  ;;  %v1757_v42 = vpop.f32.mrb[10].mxu0 }
 0x29a   : > { %5222 = vtanh.f32 %v4600_v0  ;;  %v4602_v43 = vadd.f32 %v1757_v42, %v6080_v39  ;;  %v1759_v44 = vpop.f32.mrb[11].mxu0  ;;  %v5077_v0 = vld [vmem:[%s6780_s3 + $0x14] ss:$8 sps:$4 sm:$0xff]  }
 0x29b   : > { %5224 = vtanh.f32 %v4601_v41  ;;  %v4603_v45 = vadd.f32 %v1759_v44, %v6084_v40 }
 0x29c   : > { %v5215_v46 = vpop.eup %5214  ;;  %5226 = vtanh.f32 %v4602_v43 }
 0x29d   : > { %v5217_v47 = vpop.eup %5216  ;;  %5228 = vtanh.f32 %v4603_v45  ;;  %v5080_v45 = vld [vmem:[%s6780_s3 + $0x24] ss:$8 sps:$4 sm:$0xff]  }
 0x29e   : > { %v5219_v48 = vpop.eup %5218 }
 0x29f   : > { %v5221_v49 = vpop.eup %5220  ;;  %v1986_v51 = vadd.f32 %v5219_v48, %v5215_v46  ;;  %v1763_v52 = vpop.f32.mrb[12].mxu0 }
 0x2a0   : > { %v4604_v54 = vadd.f32 %v1763_v52, %v6080_v39  ;;  %v1765_v55 = vpop.f32.mrb[13].mxu0  ;;  %v1987_v57 = vadd.f32 %v5221_v49, %v5217_v47 }
 0x2a1   : > { %v4605_v50 = vadd.f32 %v1765_v55, %v6084_v40  ;;  %v1767_v53 = vpop.f32.mrb[14].mxu0  ;;  %v2033_v56 = vpack.c.bf16 %v1986_v51, %v1984_v62  ;;  %v5078_v55 = vld [vmem:[%s6780_s3 + $0x20] ss:$8 sps:$4 sm:$0xff]  }
 0x2a2   : > { %5230 = vtanh.f32 %v4604_v54  ;;  %v4606_v58 = vadd.f32 %v1767_v53, %v6080_v39  ;;  %v1769_v59 = vpop.f32.mrb[15].mxu0  ;;  %v2034_v60 = vpack.c.bf16 %v1987_v57, %v1985_v37  ;;  %v5075_v37 = vld [vmem:[%s6780_s3 + $0x10] ss:$8 sps:$4 sm:$0xff]  }
 0x2a3   : > { %5232 = vtanh.f32 %v4605_v50  ;;  %v4607_v63 = vadd.f32 %v1769_v59, %v6084_v40  ;;  %v5083_v50 = vld [vmem:[%s6780_s3 + $0x34] ss:$8 sps:$4 sm:$0xff]   ;;  %v5081_v59 = vld [vmem:[%s6780_s3 + $0x30] ss:$8 sps:$4 sm:$0xff]  }
 0x2a4   : > { %v5223_v33 = vpop.eup %5222  ;;  %5234 = vtanh.f32 %v4606_v58  ;;  %4191 = vmatprep.mubr.msk.bf16.mxu1 %vm2110_vm2, %v2034_v60 }
 0x2a5   : > { %v5225_v62 = vpop.eup %5224  ;;  %5236 = vtanh.f32 %v4607_v63  ;;  %2169 = vmatmul.mubr.bf16.vlgmr.msra.gmra.mrb[32].mxu1 %v2033_v56 }
 0x2a6   : > { %v5227_v41 = vpop.eup %5226  ;;  %2322 = vmatpush1.bf16.msra.mxu1 %v5072_v61 }
 0x2a7   : > { %v5229_v42 = vpop.eup %5228  ;;  %v1773_v43 = vpop.f32.mrb[16].mxu0  ;;  %v1988_v44 = vadd.f32 %v5227_v41, %v5223_v33  ;;  %2323 = vmatprep.subr.bf16.mxu1 %v5077_v0  ;;  %v5086_v0 = vld [vmem:[%s6780_s3 + $0x44] ss:$8 sps:$4 sm:$0xff]  }
 0x2a8   : > { %v4608_v46 = vadd.f32 %v1773_v43, %v6080_v39  ;;  %v1775_v47 = vpop.f32.mrb[17].mxu0  ;;  %v1989_v48 = vadd.f32 %v5229_v42, %v5225_v62 }
 0x2a9   : > { %v4609_v49 = vadd.f32 %v1775_v47, %v6084_v40  ;;  %v1777_v51 = vpop.f32.mrb[18].mxu0 }
 0x2aa   : > { %5238 = vtanh.f32 %v4608_v46  ;;  %v4610_v52 = vadd.f32 %v1777_v51, %v6080_v39  ;;  %v1779_v54 = vpop.f32.mrb[19].mxu0  ;;  %2324 = vmatpush1.bf16.msra.mxu1 %v5075_v37 }
 0x2ab   : > { %5240 = vtanh.f32 %v4609_v49  ;;  %v4611_v57 = vadd.f32 %v1779_v54, %v6084_v40  ;;  %2325 = vmatprep.subr.bf16.mxu1 %v5080_v45  ;;  %v5084_v49 = vld [vmem:[%s6780_s3 + $0x40] ss:$8 sps:$4 sm:$0xff]   ;;  %v812_v54 = vadd.f32 %v6080_v39, %v6007_v1  ;;  %v815_v1 = vadd.f32 %v6084_v40, %v6013_v4 }
 0x2ac   : > { %v5231_v53 = vpop.eup %5230  ;;  %5242 = vtanh.f32 %v4610_v52 }
 0x2ad   : > { %v5233_v56 = vpop.eup %5232  ;;  %5244 = vtanh.f32 %v4611_v57 }
 0x2ae   : > { %v5235_v58 = vpop.eup %5234  ;;  %2326 = vmatpush1.bf16.msra.mxu1 %v5078_v55 }
 0x2af   : > { %v5237_v60 = vpop.eup %5236  ;;  %v1783_v61 = vpop.f32.mrb[20].mxu0  ;;  %v1990_v63 = vadd.f32 %v5235_v58, %v5231_v53  ;;  %2327 = vmatprep.subr.bf16.mxu1 %v5083_v50 }
 0x2b0   : > { %v4612_v33 = vadd.f32 %v1783_v61, %v6080_v39  ;;  %v1785_v62 = vpop.f32.mrb[21].mxu0  ;;  %v1991_v41 = vadd.f32 %v5237_v60, %v5233_v56  ;;  %v814_v56 = vadd.f32 %v6080_v39, %v6011_v3  ;;  %v817_v3 = vadd.f32 %v6084_v40, %v6017_v6 }
 0x2b1   : > { %v4613_v37 = vadd.f32 %v1785_v62, %v6084_v40  ;;  %v1787_v42 = vpop.f32.mrb[22].mxu0  ;;  %v2035_v43 = vpack.c.bf16 %v1990_v63, %v1988_v44 }
 0x2b2   : > { %5246 = vtanh.f32 %v4612_v33  ;;  %v4614_v45 = vadd.f32 %v1787_v42, %v6080_v39  ;;  %v1789_v46 = vpop.f32.mrb[23].mxu0  ;;  %v2036_v47 = vpack.c.bf16 %v1991_v41, %v1989_v48  ;;  %2328 = vmatpush1.bf16.msra.mxu1 %v5081_v59  ;;  %v813_v48 = vadd.f32 %v6084_v40, %v6009_v2 }
 0x2b3   : > { %5248 = vtanh.f32 %v4613_v37  ;;  %v4615_v51 = vadd.f32 %v1789_v46, %v6084_v40  ;;  %2329 = vmatprep.subr.bf16.mxu1 %v5086_v0  ;;  %v816_v41 = vadd.f32 %v6080_v39, %v6015_v5  ;;  %v818_v46 = vadd.f32 %v6080_v39, %v6019_v7 }
 0x2b4   : > { %v5239_v52 = vpop.eup %5238  ;;  %5250 = vtanh.f32 %v4614_v45  ;;  %4192 = vmatprep.mubr.msk.bf16.mxu1 %vm2110_vm2, %v2036_v47  ;;  %v820_v7 = vadd.f32 %v6080_v39, %v6023_v9  ;;  %v823_v9 = vadd.f32 %v6084_v40, %v6029_v12 }
 0x2b5   : > { %v5241_v44 = vpop.eup %5240  ;;  %5252 = vtanh.f32 %v4615_v51  ;;  %2177 = vmatmul.mubr.bf16.gmra.mrb[36].mxu1 %v2035_v43 }
 0x2b6   : > { %v5243_v55 = vpop.eup %5242  ;;  %2330 = vmatpush1.bf16.msra.mxu1 %v5084_v49 }
 0x2b7   : > { %v5245_v57 = vpop.eup %5244  ;;  %v1793_v50 = vpop.f32.mrb[24].mxu0  ;;  %v1992_v53 = vadd.f32 %v5243_v55, %v5239_v52  ;;  %v819_v52 = vadd.f32 %v6084_v40, %v6021_v8  ;;  %v821_v8 = vadd.f32 %v6084_v40, %v6025_v10 }
 0x2b8   : > { %v4617_v58 = vadd.f32 %v1793_v50, %v812_v54  ;;  %v1795_v59 = vpop.f32.mrb[25].mxu0  ;;  %v1993_v60 = vadd.f32 %v5245_v57, %v5241_v44 }
 0x2b9   : > { %v4619_v61 = vadd.f32 %v1795_v59, %v813_v48  ;;  %v1797_v63 = vpop.f32.mrb[26].mxu0 }
 0x2ba   : > { %5254 = vtanh.f32 %v4617_v58  ;;  %v4621_v0 = vadd.f32 %v1797_v63, %v814_v56  ;;  %v1799_v2 = vpop.f32.mrb[27].mxu0 }
 0x2bb   : > { %5256 = vtanh.f32 %v4619_v61  ;;  %v4623_v33 = vadd.f32 %v1799_v2, %v815_v1 }
 0x2bc   : > { %v5247_v62 = vpop.eup %5246  ;;  %5258 = vtanh.f32 %v4621_v0 }
 0x2bd   : > { %v5249_v37 = vpop.eup %5248  ;;  %5260 = vtanh.f32 %v4623_v33 }
 0x2be   : > { %v5251_v42 = vpop.eup %5250 }
 0x2bf   : > { %v5253_v43 = vpop.eup %5252  ;;  %v1803_v4 = vpop.f32.mrb[28].mxu0  ;;  %v1994_v45 = vadd.f32 %v5251_v42, %v5247_v62 }
 0x2c0   : > { %v4625_v47 = vadd.f32 %v1803_v4, %v816_v41  ;;  %v1805_v49 = vpop.f32.mrb[29].mxu0  ;;  %v1995_v51 = vadd.f32 %v5253_v43, %v5249_v37 }
 0x2c1   : > { %v4627_v54 = vadd.f32 %v1805_v49, %v817_v3  ;;  %v1807_v5 = vpop.f32.mrb[30].mxu0  ;;  %v2037_v44 = vpack.c.bf16 %v1994_v45, %v1992_v53  ;;  %v824_v3 = vadd.f32 %v6080_v39, %v6031_v13 }
 0x2c2   : > { %5262 = vtanh.f32 %v4625_v47  ;;  %v4629_v48 = vadd.f32 %v1807_v5, %v818_v46  ;;  %v1809_v55 = vpop.f32.mrb[31].mxu0  ;;  %v2038_v6 = vpack.c.bf16 %v1995_v51, %v1993_v60  ;;  %v822_v60 = vadd.f32 %v6080_v39, %v6027_v11 }
 0x2c3   : > { %5264 = vtanh.f32 %v4627_v54  ;;  %v4631_v57 = vadd.f32 %v1809_v55, %v819_v52  ;;  %v825_v11 = vadd.f32 %v6084_v40, %v6033_v14  ;;  %v826_v46 = vadd.f32 %v6080_v39, %v6035_v15 }
 0x2c4   : > { %v5255_v50 = vpop.eup %5254  ;;  %5266 = vtanh.f32 %v4629_v48  ;;  %4193 = vmatprep.mubr.msk.bf16.mxu1 %vm2110_vm2, %v2038_v6  ;;  %v827_v52 = vadd.f32 %v6084_v40, %v6037_v16  ;;  %v828_v15 = vadd.f32 %v6080_v39, %v6039_v17  ;;  %v829_v16 = vadd.f32 %v6084_v40, %v6041_v18 }
 0x2c5   : > { %v5257_v56 = vpop.eup %5256  ;;  %5268 = vtanh.f32 %v4631_v57  ;;  %2185 = vmatmul.mubr.bf16.gmra.mrb[40].mxu1 %v2037_v44 }
 0x2c6   : > { %v5259_v53 = vpop.eup %5258 }
 0x2c7   : > { %v5261_v58 = vpop.eup %5260  ;;  %v1813_v59 = vpop.f32.mrb[32].mxu0  ;;  %v1996_v1 = vadd.f32 %v5259_v53, %v5255_v50  ;;  %v831_v53 = vadd.f32 %v6084_v40, %v6045_v20  ;;  %v833_v20 = vadd.f32 %v6084_v40, %v6049_v22 }
 0x2c8   : > { %v4633_v61 = vadd.f32 %v1813_v59, %v820_v7  ;;  %v1815_v63 = vpop.f32.mrb[33].mxu0  ;;  %v1997_v0 = vadd.f32 %v5261_v58, %v5257_v56  ;;  %v830_v7 = vadd.f32 %v6080_v39, %v6043_v19  ;;  %v832_v19 = vadd.f32 %v6080_v39, %v6047_v21 }
 0x2c9   : > { %v4635_v2 = vadd.f32 %v1815_v63, %v821_v8  ;;  %v1817_v33 = vpop.f32.mrb[34].mxu0 }
 0x2ca   : > { %5270 = vtanh.f32 %v4633_v61  ;;  %v4637_v62 = vadd.f32 %v1817_v33, %v822_v60  ;;  %v1819_v41 = vpop.f32.mrb[35].mxu0 }
 0x2cb   : > { %5272 = vtanh.f32 %v4635_v2  ;;  %v4639_v10 = vadd.f32 %v1819_v41, %v823_v9 }
 0x2cc   : > { %v5263_v37 = vpop.eup %5262  ;;  %5274 = vtanh.f32 %v4637_v62  ;;  %v834_v62 = vadd.f32 %v6080_v39, %v6051_v23  ;;  %v836_v23 = vadd.f32 %v6080_v39, %v6055_v25 }
 0x2cd   : > { %v5265_v42 = vpop.eup %5264  ;;  %5276 = vtanh.f32 %v4639_v10 }
 0x2ce   : > { %v5267_v43 = vpop.eup %5266 }
 0x2cf   : > { %v5269_v4 = vpop.eup %5268  ;;  %v1823_v12 = vpop.f32.mrb[36].mxu0  ;;  %v1998_v45 = vadd.f32 %v5267_v43, %v5263_v37  ;;  %v835_v37 = vadd.f32 %v6084_v40, %v6053_v24 }
 0x2d0   : > { %v4641_v47 = vadd.f32 %v1823_v12, %v824_v3  ;;  %v1825_v49 = vpop.f32.mrb[37].mxu0  ;;  %v1999_v51 = vadd.f32 %v5269_v4, %v5265_v42 }
 0x2d1   : > { %v4643_v54 = vadd.f32 %v1825_v49, %v825_v11  ;;  %v1827_v13 = vpop.f32.mrb[38].mxu0  ;;  %v2039_v5 = vpack.c.bf16 %v1998_v45, %v1996_v1 }
 0x2d2   : > { %5278 = vtanh.f32 %v4641_v47  ;;  %v4645_v44 = vadd.f32 %v1827_v13, %v826_v46  ;;  %v1829_v48 = vpop.f32.mrb[39].mxu0  ;;  %v2040_v14 = vpack.c.bf16 %v1999_v51, %v1997_v0  ;;  %v837_v51 = vadd.f32 %v6084_v40, %v6057_v26 }
 0x2d3   : > { %5280 = vtanh.f32 %v4643_v54  ;;  %v4647_v55 = vadd.f32 %v1829_v48, %v827_v52  ;;  %v838_v54 = vadd.f32 %v6080_v39, %v6059_v27  ;;  %v840_v27 = vadd.f32 %v6080_v39, %v6063_v29 }
 0x2d4   : > { %v5271_v6 = vpop.eup %5270  ;;  %5282 = vtanh.f32 %v4645_v44  ;;  %4194 = vmatprep.mubr.msk.bf16.mxu1 %vm2110_vm2, %v2040_v14  ;;  %v839_v44 = vadd.f32 %v6084_v40, %v6061_v28  ;;  %v841_v28 = vadd.f32 %v6084_v40, %v6065_v30 }
 0x2d5   : > { %v5273_v57 = vpop.eup %5272  ;;  %5284 = vtanh.f32 %v4647_v55  ;;  %2193 = vmatmul.mubr.bf16.gmra.mrb[44].mxu1 %v2039_v5 }
 0x2d6   : > { %v5275_v50 = vpop.eup %5274 }
 0x2d7   : > { %v5277_v56 = vpop.eup %5276  ;;  %v1833_v8 = vpop.f32.mrb[40].mxu0  ;;  %v2000_v58 = vadd.f32 %v5275_v50, %v5271_v6 }
 0x2d8   : > { %v4649_v59 = vadd.f32 %v1833_v8, %v828_v15  ;;  %v1835_v1 = vpop.f32.mrb[41].mxu0  ;;  %v2001_v60 = vadd.f32 %v5277_v56, %v5273_v57  ;;  %v842_v8 = vadd.f32 %v6080_v39, %v6067_v31  ;;  %v2237_v39 = vld [vmem:[%s6780_s3 + $0x50] sm:$0x33] }
 0x2d9   : > { %v4651_v17 = vadd.f32 %v1835_v1, %v829_v16  ;;  %v1837_v61 = vpop.f32.mrb[42].mxu0 }
 0x2da   : > { %5286 = vtanh.f32 %v4649_v59  ;;  %v4653_v63 = vadd.f32 %v1837_v61, %v830_v7  ;;  %v1839_v0 = vpop.f32.mrb[43].mxu0  ;;  %v843_v59 = vadd.f32 %v6084_v40, %v6069_v32 }
 0x2db   : > { %5288 = vtanh.f32 %v4651_v17  ;;  %v4655_v18 = vadd.f32 %v1839_v0, %v831_v53 }
 0x2dc   : > { %v5279_v9 = vpop.eup %5278  ;;  %5290 = vtanh.f32 %v4653_v63 }
 0x2dd   : > { %v5281_v2 = vpop.eup %5280  ;;  %5292 = vtanh.f32 %v4655_v18 }
 0x2de   : > { %v5283_v33 = vpop.eup %5282 }
 0x2df   : > { %v5285_v41 = vpop.eup %5284  ;;  %v1843_v10 = vpop.f32.mrb[44].mxu0  ;;  %v2002_v3 = vadd.f32 %v5283_v33, %v5279_v9  ;;  %v4210_v33 = vcombine.high %v2237_v39, %v2237_v39 }
 0x2e0   : > { %v4657_v42 = vadd.f32 %v1843_v10, %v832_v19  ;;  %v1845_v11 = vpop.f32.mrb[45].mxu0  ;;  %v2003_v43 = vadd.f32 %v5285_v41, %v5281_v2 }
 0x2e1   : > { %v4659_v4 = vadd.f32 %v1845_v11, %v833_v20  ;;  %v1847_v21 = vpop.f32.mrb[46].mxu0  ;;  %v2041_v12 = vpack.c.bf16 %v2002_v3, %v2000_v58  ;;  %4211 = vmatprep.subr.msk.bf16.mxu1 %vm2314_vm3, %v4210_v33 }
 0x2e2   : > { %5294 = vtanh.f32 %v4657_v42  ;;  %v4661_v45 = vadd.f32 %v1847_v21, %v834_v62  ;;  %v1849_v46 = vpop.f32.mrb[47].mxu0  ;;  %v2042_v22 = vpack.c.bf16 %v2003_v43, %v2001_v60  ;;  %v4209_v62 = vcombine.low %v2237_v39, %v2237_v39  ;;  %v5111_v39 = vld [vmem:[%s6780_s3 + $0xc4] ss:$8 sps:$4 sm:$0xff]  }
 0x2e3   : > { %5296 = vtanh.f32 %v4659_v4  ;;  %v4663_v47 = vadd.f32 %v1849_v46, %v835_v37 }
 0x2e4   : > { %v5287_v49 = vpop.eup %5286  ;;  %5298 = vtanh.f32 %v4661_v45  ;;  %4195 = vmatprep.mubr.msk.bf16.mxu1 %vm2110_vm2, %v2042_v22  ;;  %v2316_v10 = vsel %vm2314_vm3, %v4209_v62, 0  ;;  %v5091_v45 = vld [vmem:[%s6780_s3 + $0x5c] ss:$8 sps:$4 sm:$0xff]  }
 0x2e5   : > { %v5289_v24 = vpop.eup %5288  ;;  %5300 = vtanh.f32 %v4663_v47  ;;  %2201 = vmatmul.mubr.bf16.gmra.mrb[48].mxu1 %v2041_v12 }
 0x2e6   : > { %v5291_v52 = vpop.eup %5290  ;;  %2332 = vmatpush1.bf16.msra.mxu1 %v2316_v10 }
 0x2e7   : > { %v5293_v13 = vpop.eup %5292  ;;  %v1853_v5 = vpop.f32.mrb[48].mxu0  ;;  %v2004_v48 = vadd.f32 %v5291_v52, %v5287_v49  ;;  %2528 = vmatprep.subr.bf16.mxu1 %v5091_v45  ;;  %v5089_v49 = vld [vmem:[%s6780_s3 + $0x58] ss:$8 sps:$4 sm:$0xff]   ;;  %v5092_v52 = vld [vmem:[%s6780_s3 + $0x68] ss:$8 sps:$4 sm:$0xff]  }
 0x2e8   : > { %v4665_v14 = vadd.f32 %v1853_v5, %v836_v23  ;;  %v1855_v55 = vpop.f32.mrb[49].mxu0  ;;  %v2005_v6 = vadd.f32 %v5293_v13, %v5289_v24  ;;  %v5095_v13 = vld [vmem:[%s6780_s3 + $0x78] ss:$8 sps:$4 sm:$0xff]   ;;  %v5100_v5 = vld [vmem:[%s6780_s3 + $0x8c] ss:$8 sps:$4 sm:$0xff]  }
 0x2e9   : > { %v4667_v25 = vadd.f32 %v1855_v55, %v837_v51  ;;  %v1857_v15 = vpop.f32.mrb[50].mxu0  ;;  %v5094_v51 = vld [vmem:[%s6780_s3 + $0x6c] ss:$8 sps:$4 sm:$0xff]  }
 0x2ea   : > { %5302 = vtanh.f32 %v4665_v14  ;;  %v4669_v57 = vadd.f32 %v1857_v15, %v838_v54  ;;  %v1859_v16 = vpop.f32.mrb[51].mxu0  ;;  %v5097_v54 = vld [vmem:[%s6780_s3 + $0x7c] ss:$8 sps:$4 sm:$0xff]   ;;  %v4227_v55 = vld [vmem:[%s6780_s3 + $0xa8] sm:$0x33] }
 0x2eb   : > { %5304 = vtanh.f32 %v4667_v25  ;;  %v4671_v26 = vadd.f32 %v1859_v16, %v839_v44  ;;  %v5098_v44 = vld [vmem:[%s6780_s3 + $0x88] ss:$8 sps:$4 sm:$0xff]  }
 0x2ec   : > { %v5295_v50 = vpop.eup %5294  ;;  %5306 = vtanh.f32 %v4669_v57  ;;  %v5101_v57 = vld [vmem:[%s6780_s3 + $0x98] ss:$8 sps:$4 sm:$0xff]  }
 0x2ed   : > { %v5297_v7 = vpop.eup %5296  ;;  %5308 = vtanh.f32 %v4671_v26 }
 0x2ee   : > { %v5299_v56 = vpop.eup %5298 }
 0x2ef   : > { %v5301_v53 = vpop.eup %5300  ;;  %v1863_v58 = vpop.f32.mrb[52].mxu0  ;;  %v2006_v1 = vadd.f32 %v5299_v56, %v5295_v50  ;;  %v4239_v50 = vcombine.high %v4227_v55, %v4227_v55 }
 0x2f0   : > { %v4673_v60 = vadd.f32 %v1863_v58, %v840_v27  ;;  %v1865_v17 = vpop.f32.mrb[53].mxu0  ;;  %v2007_v61 = vadd.f32 %v5301_v53, %v5297_v7  ;;  %v4238_v27 = vcombine.low %v4227_v55, %v4227_v55  ;;  %v5134_v55 = vld [vmem:[%s6780_s3 + $0x13c] ss:$8 sps:$4 sm:$0xff]  }
 0x2f1   : > { %v4675_v63 = vadd.f32 %v1865_v17, %v841_v28  ;;  %v1867_v29 = vpop.f32.mrb[54].mxu0  ;;  %v2043_v0 = vpack.c.bf16 %v2006_v1, %v2004_v48  ;;  %v5103_v48 = vld [vmem:[%s6780_s3 + $0x9c] ss:$8 sps:$4 sm:$0xff]  }
 0x2f2   : > { %5310 = vtanh.f32 %v4673_v60  ;;  %v4677_v18 = vadd.f32 %v1867_v29, %v842_v8  ;;  %v1869_v9 = vpop.f32.mrb[55].mxu0  ;;  %v2044_v30 = vpack.c.bf16 %v2007_v61, %v2005_v6  ;;  %v2523_v7 = vsel %vm2314_vm3, %v4238_v27, 0  ;;  %v5108_v28 = vld [vmem:[%s6780_s3 + $0xb4] ss:$8 sps:$4 sm:$0xff]   ;;  %v5142_v27 = vld [vmem:[%s6780_s3 + $0x164] ss:$8 sps:$4 sm:$0xff]  }
 0x2f3   : > { %5312 = vtanh.f32 %v4675_v63  ;;  %v4679_v19 = vadd.f32 %v1869_v9, %v843_v59 }
 0x2f4   : > { %v5303_v2 = vpop.eup %5302  ;;  %5314 = vtanh.f32 %v4677_v18  ;;  %4196 = vmatprep.mubr.msk.bf16.mxu1 %vm2110_vm2, %v2044_v30 }
 0x2f5   : > { %v5305_v31 = vpop.eup %5304  ;;  %5316 = vtanh.f32 %v4679_v19  ;;  %2209 = vmatmul.mubr.bf16.gmra.mrb[52].mxu1 %v2043_v0 }
 0x2f6   : > { %v5307_v32 = vpop.eup %5306 }
 0x2f7   : > { %v5309_v40 = vpop.eup %5308  ;;  %v2008_v20 = vadd.f32 %v5307_v32, %v5303_v2  ;;  %v5106_v32 = vld [vmem:[%s6780_s3 + $0xb0] ss:$8 sps:$4 sm:$0xff]  }
 0x2f8   : > { %v2009_v41 = vadd.f32 %v5309_v40, %v5305_v31  ;;  %v5109_v40 = vld [vmem:[%s6780_s3 + $0xc0] ss:$8 sps:$4 sm:$0xff]  }
 0x2fc   : > { %v5311_v37 = vpop.eup %5310 }
 0x2fd   : > { %v5313_v3 = vpop.eup %5312 }
 0x2fe   : > { %v5315_v42 = vpop.eup %5314 }
 0x2ff   : > { %v5317_v11 = vpop.eup %5316  ;;  %v2010_v43 = vadd.f32 %v5315_v42, %v5311_v37  ;;  %v5112_v37 = vld [vmem:[%s6780_s3 + $0xd0] ss:$8 sps:$4 sm:$0xff]  }
 0x300   : > { %v2011_v4 = vadd.f32 %v5317_v11, %v5313_v3  ;;  %v5117_v11 = vld [vmem:[%s6780_s3 + $0xe4] ss:$8 sps:$4 sm:$0xff]  }
 0x301   : > { %v2045_v21 = vpack.c.bf16 %v2010_v43, %v2008_v20  ;;  %v5114_v20 = vld [vmem:[%s6780_s3 + $0xd4] ss:$8 sps:$4 sm:$0xff]   ;;  %v5115_v43 = vld [vmem:[%s6780_s3 + $0xe0] ss:$8 sps:$4 sm:$0xff]  }
 0x302   : > { %v2046_v12 = vpack.c.bf16 %v2011_v4, %v2009_v41  ;;  %v5120_v4 = vld [vmem:[%s6780_s3 + $0xf4] ss:$8 sps:$4 sm:$0xff]  }
 0x304   : > { %4197 = vmatprep.mubr.msk.bf16.mxu1 %vm2110_vm2, %v2046_v12  ;;  %v5118_v12 = vld [vmem:[%s6780_s3 + $0xf0] ss:$8 sps:$4 sm:$0xff]  }
 0x305   : > { %2217 = vmatmul.mubr.bf16.gmra.mrb[56].mxu1 %v2045_v21  ;;  %v4256_v21 = vld [vmem:[%s6780_s3 + $0x100] sm:$0x33] }
 0x306   : > { %2353 = vmatprep.mubr.bf16.mxu1 %v5426_v34  ;;  %v4268_v45 = vcombine.high %v4256_v21, %v4256_v21 }
 0x378   : > { %v2170_v46 = vpop.f32.mrb[32].mxu1 }
 0x379   : > { %v2172_v22 = vpop.f32.mrb[33].mxu1 }
 0x37a   : > { %v6220_v47 = vpop.f32.mrb[34].mxu1 }
 0x37b   : > { %v2238_v23 = vpack.c.bf16 %v6220_v47, %v2170_v46  ;;  %v2175_v24 = vpop.f32.mrb[35].mxu1  ;;  %v4267_v46 = vcombine.low %v4256_v21, %v4256_v21 }
 0x37d   : > { %4212 = vmatmul.mubr.msk.bf16.vlgmr.msra.gmra.mrb[60].mxu1 %vm2298_vm4, %v2238_v23  ;;  %v2703_v22 = vsel %vm2314_vm3, %v4267_v46, 0 }
 0x37e   : > { %2363 = vmatprep.mubr.bf16.mxu1 %v5426_v34  ;;  %2529 = vmatpush1.bf16.msra.mxu1 %v5089_v49 }
 0x37f   : > { %2530 = vmatprep.subr.bf16.mxu1 %v5094_v51 }
 0x382   : > { %2531 = vmatpush1.bf16.msra.mxu1 %v5092_v52 }
 0x383   : > { %2532 = vmatprep.subr.bf16.mxu1 %v5097_v54 }
 0x386   : > { %2533 = vmatpush1.bf16.msra.mxu1 %v5095_v13  ;;  %v5123_v13 = vld [vmem:[%s6780_s3 + $0x108] ss:$8 sps:$4 sm:$0xff]  }
 0x387   : > { %2534 = vmatprep.subr.bf16.mxu1 %v5100_v5  ;;  %v5128_v5 = vld [vmem:[%s6780_s3 + $0x11c] ss:$8 sps:$4 sm:$0xff]  }
 0x388   : > { %v2178_v14 = vpop.f32.mrb[36].mxu1 }
 0x389   : > { %v2447_v6 = vpack.c.bf16 %v2178_v14, %v6220_v47  ;;  %v2180_v25 = vpop.f32.mrb[37].mxu1  ;;  %v5125_v47 = vld [vmem:[%s6780_s3 + $0x10c] ss:$8 sps:$4 sm:$0xff]  }
 0x38a   : > { %v2181_v15 = vpop.f32.mrb[38].mxu1  ;;  %2535 = vmatpush1.bf16.msra.mxu1 %v5098_v44  ;;  %v5126_v44 = vld [vmem:[%s6780_s3 + $0x118] ss:$8 sps:$4 sm:$0xff]   ;;  %v5137_v25 = vld [vmem:[%s6780_s3 + $0x14c] ss:$8 sps:$4 sm:$0xff]  }
 0x38b   : > { %v6256_v16 = vpack.c.bf16 %v2181_v15, %v2178_v14  ;;  %v2183_v26 = vpop.f32.mrb[39].mxu1  ;;  %2536 = vmatprep.subr.bf16.mxu1 %v5103_v48  ;;  %v5131_v48 = vld [vmem:[%s6780_s3 + $0x12c] ss:$8 sps:$4 sm:$0xff]   ;;  %v5129_v14 = vld [vmem:[%s6780_s3 + $0x128] ss:$8 sps:$4 sm:$0xff]  }
 0x38d   : > { %4213 = vmatmul.mubr.msk.bf16.gmra.mrb[64].mxu1 %vm2298_vm4, %v6256_v16 }
 0x38e   : > { %2373 = vmatprep.mubr.bf16.mxu1 %v5426_v34  ;;  %2537 = vmatpush1.bf16.msra.mxu1 %v5101_v57  ;;  %v5135_v57 = vld [vmem:[%s6780_s3 + $0x148] ss:$8 sps:$4 sm:$0xff]  }
 0x38f   : > { %4240 = vmatprep.subr.msk.bf16.mxu1 %vm2314_vm3, %v4239_v50 }
 0x392   : > { %2539 = vmatpush1.bf16.msra.mxu1 %v2523_v7  ;;  %v5140_v7 = vld [vmem:[%s6780_s3 + $0x160] ss:$8 sps:$4 sm:$0xff]  }
 0x393   : > { %2708 = vmatprep.subr.bf16.mxu1 %v5108_v28  ;;  %v5145_v28 = vld [vmem:[%s6780_s3 + $0x174] ss:$8 sps:$4 sm:$0xff]  }
 0x398   : > { %v2186_v56 = vpop.f32.mrb[40].mxu1 }
 0x399   : > { %v6266_v8 = vpack.c.bf16 %v2186_v56, %v2181_v15  ;;  %v2188_v53 = vpop.f32.mrb[41].mxu1  ;;  %v4285_v15 = vld [vmem:[%s6780_s3 + $0x158] sm:$0x33] }
 0x39a   : > { %v2189_v58 = vpop.f32.mrb[42].mxu1  ;;  %v4296_v26 = vcombine.low %v4285_v15, %v4285_v15  ;;  %v5148_v53 = vld [vmem:[%s6780_s3 + $0x184] ss:$8 sps:$4 sm:$0xff]  }
 0x39b   : > { %v6268_v59 = vpack.c.bf16 %v2189_v58, %v2186_v56  ;;  %v2191_v1 = vpop.f32.mrb[43].mxu1  ;;  %v5143_v56 = vld [vmem:[%s6780_s3 + $0x170] ss:$8 sps:$4 sm:$0xff]  }
 0x39c   : > { %v2883_v50 = vsel %vm2314_vm3, %v4296_v26, 0  ;;  %v5149_v1 = vld [vmem:[%s6780_s3 + $0x190] ss:$8 sps:$4 sm:$0xff]  }
 0x39d   : > { %4214 = vmatmul.mubr.msk.bf16.gmra.mrb[68].mxu1 %vm2298_vm4, %v6268_v59 }
 0x39e   : > { %2383 = vmatprep.mubr.bf16.mxu1 %v5426_v34 }
 0x3a8   : > { %v2194_v60 = vpop.f32.mrb[44].mxu1 }
 0x3a9   : > { %v6273_v17 = vpack.c.bf16 %v2194_v60, %v2189_v58  ;;  %v2196_v61 = vpop.f32.mrb[45].mxu1  ;;  %v5146_v58 = vld [vmem:[%s6780_s3 + $0x180] ss:$8 sps:$4 sm:$0xff]  }
 0x3aa   : > { %v2197_v63 = vpop.f32.mrb[46].mxu1  ;;  %v4314_v61 = vld [vmem:[%s6780_s3 + $0x1b0] sm:$0x33] }
 0x3ab   : > { %v6275_v29 = vpack.c.bf16 %v2197_v63, %v2194_v60  ;;  %v2199_v0 = vpop.f32.mrb[47].mxu1  ;;  %v5154_v60 = vld [vmem:[%s6780_s3 + $0x1a4] ss:$8 sps:$4 sm:$0xff]  }
 0x3ac   : > { %v4325_v0 = vcombine.low %v4314_v61, %v4314_v61 }
 0x3ad   : > { %4215 = vmatmul.mubr.msk.bf16.gmra.mrb[72].mxu1 %vm2298_vm4, %v6275_v29 }
 0x3ae   : > { %2393 = vmatprep.mubr.bf16.mxu1 %v5426_v34 }
 0x3b8   : > { %v2202_v18 = vpop.f32.mrb[48].mxu1 }
 0x3b9   : > { %v6280_v9 = vpack.c.bf16 %v2202_v18, %v2197_v63  ;;  %v2204_v30 = vpop.f32.mrb[49].mxu1  ;;  %v4326_v63 = vcombine.high %v4314_v61, %v4314_v61  ;;  %v5167_v61 = vld [vmem:[%s6782_s5] sm:$0xff]  }
 0x3ba   : > { %v2205_v19 = vpop.f32.mrb[50].mxu1  ;;  %v5158_v30 = vld [vmem:[%s6781_s4 + $0x8] sm:$0xff]  }
 0x3bb   : > { %v6282_v2 = vpack.c.bf16 %v2205_v19, %v2202_v18  ;;  %v2207_v31 = vpop.f32.mrb[51].mxu1  ;;  %v3063_v18 = vsel %vm2314_vm3, %v4325_v0, 0 }
 0x3bc   : > { %v5163_v31 = vld [vmem:[%s6781_s4 + $0x30] sm:$0xff]  }
 0x3bd   : > { %4216 = vmatmul.mubr.msk.bf16.gmra.mrb[76].mxu1 %vm2298_vm4, %v6282_v2 }
 0x3be   : > { %2560 = vmatprep.mubr.bf16.mxu1 %v5426_v34 }
 0x3c5   : > { %4241 = vmatmul.mubr.msk.bf16.vlgmr.msra.gmra.mrb[60].mxu1 %vm2298_vm4, %v2447_v6  ;;  %v5132_v6 = vld [vmem:[%s6780_s3 + $0x138] ss:$8 sps:$4 sm:$0xff]  }
 0x3c6   : > { %2709 = vmatpush1.bf16.msra.mxu1 %v5106_v32  ;;  %2570 = vmatprep.mubr.bf16.mxu1 %v5426_v34  ;;  %v5164_v32 = vld [vmem:[%s6781_s4 + $0x38] sm:$0xff]  }
 0x3c7   : > { %2710 = vmatprep.subr.bf16.mxu1 %v5111_v39  ;;  %v5165_v39 = vld [vmem:[%s6781_s4 + $0x40] sm:$0xff]  }
 0x3c8   : > { %v2210_v33 = vpop.f32.mrb[52].mxu1 }
 0x3c9   : > { %v6301_v62 = vpack.c.bf16 %v2210_v33, %v2205_v19  ;;  %v2212_v41 = vpop.f32.mrb[53].mxu1  ;;  %v5159_v19 = vld [vmem:[%s6781_s4 + $0x10] sm:$0xff]  }
 0x3ca   : > { %v6303_v10 = vpop.f32.mrb[54].mxu1  ;;  %2711 = vmatpush1.bf16.msra.mxu1 %v5109_v40  ;;  %v5166_v40 = vld [vmem:[%s6781_s4 + $0x48] sm:$0xff]  }
 0x3cb   : > { %v6309_v3 = vpack.c.bf16 %v6303_v10, %v2210_v33  ;;  %v2215_v42 = vpop.f32.mrb[55].mxu1  ;;  %2712 = vmatprep.subr.bf16.mxu1 %v5114_v20  ;;  %v5427_v20 = vmov 0.0   ;;  %v4198_v33 = vld [vmem:[%s6785_s8 + $0x1] ss:$8 sm:$0x3] }
 0x3cc   : > { %v6516_v41 = vrot.slane %v4198_v33, %v784_v38 }
 0x3cd   : > { %4242 = vmatmul.mubr.msk.bf16.gmra.mrb[64].mxu1 %vm2298_vm4, %v6266_v8 }
 0x3ce   : > { %2580 = vmatprep.mubr.bf16.mxu1 %v5426_v34  ;;  %2713 = vmatpush1.bf16.msra.mxu1 %v5112_v37 }
 0x3cf   : > { %2714 = vmatprep.subr.bf16.mxu1 %v5117_v11 }
 0x3d2   : > { %2715 = vmatpush1.bf16.msra.mxu1 %v5115_v43 }
 0x3d3   : > { %2716 = vmatprep.subr.bf16.mxu1 %v5120_v4 }
 0x3d5   : > { %4243 = vmatmul.mubr.msk.bf16.gmra.mrb[68].mxu1 %vm2298_vm4, %v6273_v17 }
 0x3d6   : > { %2590 = vmatprep.mubr.bf16.mxu1 %v5426_v34  ;;  %2717 = vmatpush1.bf16.msra.mxu1 %v5118_v12 }
 0x3d7   : > { %4269 = vmatprep.subr.msk.bf16.mxu1 %vm2314_vm3, %v4268_v45 }
 0x3d8   : > { %v6337_v49 = vpop.f32.mrb[56].mxu1 }
 0x3d9   : > { %v2823_v23 = vpack.c.bf16 %v6337_v49, %v6303_v10  ;;  %v2220_v24 = vpop.f32.mrb[57].mxu1 }
 0x3da   : > { %v6341_v51 = vpop.f32.mrb[58].mxu1  ;;  %2719 = vmatpush1.bf16.msra.mxu1 %v2703_v22 }
 0x3db   : > { %v3003_v52 = vpack.c.bf16 %v6341_v51, %v6337_v49  ;;  %v2223_v54 = vpop.f32.mrb[59].mxu1  ;;  %2888 = vmatprep.subr.bf16.mxu1 %v5125_v47 }
 0x3dd   : > { %4244 = vmatmul.mubr.msk.bf16.gmra.mrb[72].mxu1 %vm2298_vm4, %v6280_v9 }
 0x3de   : > { %2600 = vmatprep.mubr.bf16.mxu1 %v5426_v34 }
 0x3e5   : > { %4245 = vmatmul.mubr.msk.bf16.gmra.mrb[76].mxu1 %vm2298_vm4, %v6301_v62 }
 0x3e6   : > { %2740 = vmatprep.mubr.bf16.mxu1 %v5426_v34 }
 0x3ed   : > { %4270 = vmatmul.mubr.msk.bf16.vlgmr.msra.gmra.mrb[60].mxu1 %vm2298_vm4, %v6256_v16  ;;  %v4297_v16 = vcombine.high %v4285_v15, %v4285_v15 }
 0x3ee   : > { %2889 = vmatpush1.bf16.msra.mxu1 %v5123_v13  ;;  %2750 = vmatprep.mubr.bf16.mxu1 %v5426_v34 }
 0x3ef   : > { %2890 = vmatprep.subr.bf16.mxu1 %v5128_v5 }
 0x3f2   : > { %2891 = vmatpush1.bf16.msra.mxu1 %v5126_v44 }
 0x3f3   : > { %2892 = vmatprep.subr.bf16.mxu1 %v5131_v48 }
 0x3f5   : > { %4271 = vmatmul.mubr.msk.bf16.gmra.mrb[64].mxu1 %vm2298_vm4, %v6268_v59 }
 0x3f6   : > { %2760 = vmatprep.mubr.bf16.mxu1 %v5426_v34  ;;  %2893 = vmatpush1.bf16.msra.mxu1 %v5129_v14 }
 0x3f7   : > { %2894 = vmatprep.subr.bf16.mxu1 %v5134_v55 }
 0x3fa   : > { %2895 = vmatpush1.bf16.msra.mxu1 %v5132_v6 }
 0x3fb   : > { %2896 = vmatprep.subr.bf16.mxu1 %v5137_v25 }
 0x3fd   : > { %4272 = vmatmul.mubr.msk.bf16.gmra.mrb[68].mxu1 %vm2298_vm4, %v6275_v29 }
 0x3fe   : > { %2770 = vmatprep.mubr.bf16.mxu1 %v5426_v34  ;;  %2897 = vmatpush1.bf16.msra.mxu1 %v5135_v57 }
 0x3ff   : > { %4298 = vmatprep.subr.msk.bf16.mxu1 %vm2314_vm3, %v4297_v16 }
 0x402   : > { %2899 = vmatpush1.bf16.msra.mxu1 %v2883_v50 }
 0x403   : > { %3068 = vmatprep.subr.bf16.mxu1 %v5142_v27 }
 0x405   : > { %4273 = vmatmul.mubr.msk.bf16.gmra.mrb[72].mxu1 %vm2298_vm4, %v6282_v2 }
 0x406   : > { %2780 = vmatprep.mubr.bf16.mxu1 %v5426_v34 }
 0x40d   : > { %4274 = vmatmul.mubr.msk.bf16.gmra.mrb[76].mxu1 %vm2298_vm4, %v6309_v3 }
 0x40e   : > { %2920 = vmatprep.mubr.bf16.mxu1 %v5426_v34 }
 0x415   : > { %4299 = vmatmul.mubr.msk.bf16.vlgmr.msra.gmra.mrb[60].mxu1 %vm2298_vm4, %v6266_v8  ;;  %v5151_v8 = vld [vmem:[%s6780_s3 + $0x194] ss:$8 sps:$4 sm:$0xff]  }
 0x416   : > { %3069 = vmatpush1.bf16.msra.mxu1 %v5140_v7  ;;  %2930 = vmatprep.mubr.bf16.mxu1 %v5426_v34 }
 0x417   : > { %3070 = vmatprep.subr.bf16.mxu1 %v5145_v28 }
 0x41a   : > { %3071 = vmatpush1.bf16.msra.mxu1 %v5143_v56 }
 0x41b   : > { %3072 = vmatprep.subr.bf16.mxu1 %v5148_v53 }
 0x41d   : > { %4300 = vmatmul.mubr.msk.bf16.gmra.mrb[64].mxu1 %vm2298_vm4, %v6273_v17  ;;  %v5152_v17 = vld [vmem:[%s6780_s3 + $0x1a0] ss:$8 sps:$4 sm:$0xff]  }
 0x41e   : > { %2940 = vmatprep.mubr.bf16.mxu1 %v5426_v34  ;;  %3073 = vmatpush1.bf16.msra.mxu1 %v5146_v58 }
 0x41f   : > { %3074 = vmatprep.subr.bf16.mxu1 %v5151_v8 }
 0x422   : > { %3075 = vmatpush1.bf16.msra.mxu1 %v5149_v1 }
 0x423   : > { %3076 = vmatprep.subr.bf16.mxu1 %v5154_v60 }
 0x425   : > { %4301 = vmatmul.mubr.msk.bf16.gmra.mrb[68].mxu1 %vm2298_vm4, %v6280_v9  ;;  %v5157_v9 = vld [vmem:[%s6781_s4] sm:$0xff]  }
 0x426   : > { %2950 = vmatprep.mubr.bf16.mxu1 %v5426_v34  ;;  %3077 = vmatpush1.bf16.msra.mxu1 %v5152_v17 }
 0x427   : > { %4327 = vmatprep.subr.msk.bf16.mxu1 %vm2314_vm3, %v4326_v63 }
 0x42a   : > { %3079 = vmatpush1.bf16.msra.mxu1 %v3063_v18 }
 0x42b   : > { %3296 = vmatprep.subr.bf16.mxu1 %v5426_v34 }
 0x42d   : > { %4302 = vmatmul.mubr.msk.bf16.gmra.mrb[72].mxu1 %vm2298_vm4, %v6301_v62  ;;  %v6512_v62 = vrot.slane %v4198_v33, %v780_v36 }
 0x42e   : > { %2960 = vmatprep.mubr.bf16.mxu1 %v5426_v34 }
 0x435   : > { %4303 = vmatmul.mubr.msk.bf16.gmra.mrb[76].mxu1 %vm2298_vm4, %v2823_v23 }
 0x436   : > { %3100 = vmatprep.mubr.bf16.mxu1 %v5426_v34 }
 0x43d   : > { %4328 = vmatmul.mubr.msk.bf16.vlgmr.msra.gmra.mrb[60].mxu1 %vm2298_vm4, %v6268_v59  ;;  %v5160_v59 = vld [vmem:[%s6781_s4 + $0x18] sm:$0xff]  }
 0x43e   : > { %3110 = vmatprep.mubr.bf16.mxu1 %v5426_v34  ;;  %3297 = vmatpush1.bf16.msra.mxu1 %v5157_v9  ;;  %v5168_v9 = vld [vmem:[%s6782_s5 + $0x8] sm:$0xff]  }
 0x43f   : > { %3298 = vmatprep.subr.bf16.mxu1 %v5426_v34 }
 0x442   : > { %3299 = vmatpush1.bf16.msra.mxu1 %v5158_v30 }
 0x443   : > { %3300 = vmatprep.subr.bf16.mxu1 %v5426_v34 }
 0x445   : > { %4329 = vmatmul.mubr.msk.bf16.gmra.mrb[64].mxu1 %vm2298_vm4, %v6275_v29  ;;  %v5161_v29 = vld [vmem:[%s6781_s4 + $0x20] sm:$0xff]  }
 0x446   : > { %3120 = vmatprep.mubr.bf16.mxu1 %v5426_v34  ;;  %3301 = vmatpush1.bf16.msra.mxu1 %v5159_v19 }
 0x447   : > { %3302 = vmatprep.subr.bf16.mxu1 %v5426_v34 }
 0x44a   : > { %3303 = vmatpush1.bf16.msra.mxu1 %v5160_v59 }
 0x44b   : > { %3304 = vmatprep.subr.bf16.mxu1 %v5426_v34 }
 0x44d   : > { %4330 = vmatmul.mubr.msk.bf16.gmra.mrb[68].mxu1 %vm2298_vm4, %v6282_v2  ;;  %v5162_v2 = vld [vmem:[%s6781_s4 + $0x28] sm:$0xff]  }
 0x44e   : > { %3130 = vmatprep.mubr.bf16.mxu1 %v5426_v34  ;;  %3305 = vmatpush1.bf16.msra.mxu1 %v5161_v29 }
 0x44f   : > { %3306 = vmatprep.subr.bf16.mxu1 %v5426_v34 }
 0x452   : > { %3307 = vmatpush1.bf16.msra.mxu1 %v5162_v2 }
 0x453   : > { %3308 = vmatprep.subr.bf16.mxu1 %v5426_v34 }
 0x455   : > { %4331 = vmatmul.mubr.msk.bf16.gmra.mrb[72].mxu1 %vm2298_vm4, %v6309_v3 }
 0x456   : > { %3140 = vmatprep.mubr.bf16.mxu1 %v5426_v34  ;;  %3309 = vmatpush1.bf16.msra.mxu1 %v5163_v31 }
 0x457   : > { %3310 = vmatprep.subr.bf16.mxu1 %v5426_v34 }
 0x45a   : > { %3311 = vmatpush1.bf16.msra.mxu1 %v5164_v32 }
 0x45b   : > { %3312 = vmatprep.subr.bf16.mxu1 %v5426_v34 }
 0x45d   : > { %4332 = vmatmul.mubr.msk.bf16.gmra.mrb[76].mxu1 %vm2298_vm4, %v3003_v52 }
 0x45e   : > { %3313 = vmatpush1.bf16.msra.mxu1 %v5165_v39 }
 0x45f   : > { %3314 = vmatprep.subr.bf16.mxu1 %v5426_v34 }
 0x462   : > { %3315 = vmatpush1.bf16.msra.mxu1 %v5166_v40 }
 0x463   : > { %4482 = vmatprep.subr.bf16.mxu1 %v5427_v20 }
 0x510   : > { %v3102_v34 = vpop.f32.mrb[60].mxu1 }
 0x511   : > { %v4680_v10 = vadd.f32 %v3102_v34, %v6512_v62  ;;  %v3104_v37 = vpop.f32.mrb[61].mxu1  ;;  %v5169_v34 = vld [vmem:[%s6782_s5 + $0x10] sm:$0xff]  }
 0x512   : > { %v4681_v3 = vadd.f32 %v3104_v37, %v6516_v41  ;;  %v3106_v42 = vpop.f32.mrb[62].mxu1 }
 0x513   : > { %5318 = vtanh.f32 %v4680_v10  ;;  %v4682_v11 = vadd.f32 %v3106_v42, %v6512_v62  ;;  %v3108_v43 = vpop.f32.mrb[63].mxu1 }
 0x514   : > { %5320 = vtanh.f32 %v4681_v3  ;;  %v4683_v4 = vadd.f32 %v3108_v43, %v6516_v41 }
 0x515   : > { %5322 = vtanh.f32 %v4682_v11 }
 0x516   : > { %5324 = vtanh.f32 %v4683_v4 }
 0x518   : > { %v3112_v36 = vpop.f32.mrb[64].mxu1 }
 0x519   : > { %v4684_v35 = vadd.f32 %v3112_v36, %v6512_v62  ;;  %v3114_v38 = vpop.f32.mrb[65].mxu1 }
 0x51a   : > { %v4685_v21 = vadd.f32 %v3114_v38, %v6516_v41  ;;  %v3116_v12 = vpop.f32.mrb[66].mxu1 }
 0x51b   : > { %5326 = vtanh.f32 %v4684_v35  ;;  %v4686_v45 = vadd.f32 %v3116_v12, %v6512_v62  ;;  %v3118_v46 = vpop.f32.mrb[67].mxu1 }
 0x51c   : > { %5328 = vtanh.f32 %v4685_v21  ;;  %v4687_v22 = vadd.f32 %v3118_v46, %v6516_v41 }
 0x51d   : > { %v5319_v47 = vpop.eup %5318  ;;  %5330 = vtanh.f32 %v4686_v45 }
 0x51e   : > { %v5321_v49 = vpop.eup %5320  ;;  %5332 = vtanh.f32 %v4687_v22 }
 0x51f   : > { %v5323_v23 = vpop.eup %5322 }
 0x520   : > { %v5325_v24 = vpop.eup %5324  ;;  %v3191_v51 = vadd.f32 %v5323_v23, %v5319_v47  ;;  %v3122_v52 = vpop.f32.mrb[68].mxu1 }
 0x521   : > { %v4688_v54 = vadd.f32 %v3122_v52, %v6512_v62  ;;  %v3124_v13 = vpop.f32.mrb[69].mxu1  ;;  %v3192_v5 = vadd.f32 %v5325_v24, %v5321_v49  ;;  %v5172_v24 = vld [vmem:[%s6782_s5 + $0x28] sm:$0xff]  }
 0x522   : > { %v4689_v44 = vadd.f32 %v3124_v13, %v6516_v41  ;;  %v3126_v48 = vpop.f32.mrb[70].mxu1 }
 0x523   : > { %5334 = vtanh.f32 %v4688_v54  ;;  %v4690_v14 = vadd.f32 %v3126_v48, %v6512_v62  ;;  %v3128_v55 = vpop.f32.mrb[71].mxu1  ;;  %v5175_v48 = vld [vmem:[%s6782_s5 + $0x40] sm:$0xff]  }
 0x524   : > { %5336 = vtanh.f32 %v4689_v44  ;;  %v4691_v6 = vadd.f32 %v3128_v55, %v6516_v41  ;;  %v5174_v44 = vld [vmem:[%s6782_s5 + $0x38] sm:$0xff]   ;;  %v5176_v55 = vld [vmem:[%s6782_s5 + $0x48] sm:$0xff]  }
 0x525   : > { %v5327_v25 = vpop.eup %5326  ;;  %5338 = vtanh.f32 %v4690_v14 }
 0x526   : > { %v5329_v15 = vpop.eup %5328  ;;  %5340 = vtanh.f32 %v4691_v6 }
 0x527   : > { %v5331_v57 = vpop.eup %5330 }
 0x528   : > { %v5333_v16 = vpop.eup %5332  ;;  %v3193_v26 = vadd.f32 %v5331_v57, %v5327_v25  ;;  %v3132_v50 = vpop.f32.mrb[72].mxu1  ;;  %v5177_v57 = vld [vmem:[%s6782_s5 + $0x50] sm:$0xff]  }
 0x529   : > { %v4692_v27 = vadd.f32 %v3132_v50, %v6512_v62  ;;  %v3134_v7 = vpop.f32.mrb[73].mxu1  ;;  %v3194_v28 = vadd.f32 %v5333_v16, %v5329_v15  ;;  %v5178_v50 = vld [vmem:[%s6782_s5 + $0x58] sm:$0xff]  }
 0x52a   : > { %v4693_v56 = vadd.f32 %v3134_v7, %v6516_v41  ;;  %v3136_v53 = vpop.f32.mrb[74].mxu1  ;;  %v3221_v58 = vpack.c.bf16 %v3193_v26, %v3191_v51 }
 0x52b   : > { %5342 = vtanh.f32 %v4692_v27  ;;  %v4694_v8 = vadd.f32 %v3136_v53, %v6512_v62  ;;  %v3138_v1 = vpop.f32.mrb[75].mxu1  ;;  %v3222_v60 = vpack.c.bf16 %v3194_v28, %v3192_v5  ;;  %v5173_v5 = vld [vmem:[%s6782_s5 + $0x30] sm:$0xff]   ;;  %v5180_v53 = vld [vmem:[%s6782_s5 + $0x68] sm:$0xff]  }
 0x52c   : > { %5344 = vtanh.f32 %v4693_v56  ;;  %v4695_v17 = vadd.f32 %v3138_v1, %v6516_v41  ;;  %v5179_v56 = vld [vmem:[%s6782_s5 + $0x60] sm:$0xff]  }
 0x52d   : > { %v5335_v63 = vpop.eup %5334  ;;  %5346 = vtanh.f32 %v4694_v8  ;;  %4343 = vmatprep.mubr.msk.bf16.mxu1 %vm561_vm0, %v3222_v60  ;;  %v5182_v8 = vld [vmem:[%s6782_s5 + $0x78] sm:$0xff]   ;;  %v5183_v60 = vld [vmem:[%s6782_s5 + $0x80] sm:$0xff]  }
 0x52e   : > { %v5337_v0 = vpop.eup %5336  ;;  %5348 = vtanh.f32 %v4695_v17  ;;  %3329 = vmatmul.mubr.bf16.vlgmr.msra.gmra.mrb[80].mxu1 %v3221_v58  ;;  %v5181_v58 = vld [vmem:[%s6782_s5 + $0x70] sm:$0xff]  }
 0x52f   : > { %v5339_v18 = vpop.eup %5338  ;;  %4483 = vmatpush3.bf16.msra.mxu1 %v5167_v61  ;;  %v5184_v61 = vld [vmem:[%s6782_s5 + $0x88] sm:$0xff]   ;;  %v5185_v17 = vld [vmem:[%s6782_s5 + $0x90] sm:$0xff]  }
 0x530   : > { %v5341_v30 = vpop.eup %5340  ;;  %v3142_v19 = vpop.f32.mrb[76].mxu1  ;;  %v3195_v59 = vadd.f32 %v5339_v18, %v5335_v63  ;;  %4484 = vmatprep.subr.bf16.mxu1 %v5427_v20  ;;  %v5186_v63 = vld [vmem:[%s6782_s5 + $0x98] sm:$0xff]  }
 0x531   : > { %v4696_v29 = vadd.f32 %v3142_v19, %v6512_v62  ;;  %v3144_v2 = vpop.f32.mrb[77].mxu1  ;;  %v3196_v31 = vadd.f32 %v5341_v30, %v5337_v0  ;;  %v5187_v0 = vld [vmem:[%s6782_s5 + $0xa0] sm:$0xff]   ;;  %v5189_v30 = vld [vmem:[%s6782_s5 + $0xb0] sm:$0xff]   ;;  %v5190_v19 = vld [vmem:[%s6782_s5 + $0xb8] sm:$0xff]  }
 0x532   : > { %v4697_v32 = vadd.f32 %v3144_v2, %v6516_v41  ;;  %v3146_v39 = vpop.f32.mrb[78].mxu1 }
 0x533   : > { %5350 = vtanh.f32 %v4696_v29  ;;  %v4698_v40 = vadd.f32 %v3146_v39, %v6512_v62  ;;  %v3148_v33 = vpop.f32.mrb[79].mxu1  ;;  %4485 = vmatpush3.bf16.msra.mxu1 %v5168_v9  ;;  %v5170_v62 = vld [vmem:[%s6782_s5 + $0x18] sm:$0xff]   ;;  %v5188_v9 = vld [vmem:[%s6782_s5 + $0xa8] sm:$0xff]   ;;  %v5192_v29 = vld [vmem:[%s6783_s6] sm:$0xff]  }
 0x534   : > { %5352 = vtanh.f32 %v4697_v32  ;;  %v4699_v10 = vadd.f32 %v3148_v33, %v6516_v41  ;;  %4486 = vmatprep.subr.bf16.mxu1 %v5427_v20  ;;  %v5171_v41 = vld [vmem:[%s6782_s5 + $0x20] sm:$0xff]   ;;  %v5194_v32 = vld [vmem:[%s6783_s6 + $0x10] sm:$0xff]   ;;  %v5195_v39 = vld [vmem:[%s6783_s6 + $0x18] sm:$0xff]  }
 0x535   : > { %v5343_v37 = vpop.eup %5342  ;;  %5354 = vtanh.f32 %v4698_v40  ;;  %v5196_v40 = vld [vmem:[%s6783_s6 + $0x20] sm:$0xff]   ;;  %v5197_v33 = vld [vmem:[%s6783_s6 + $0x28] sm:$0xff]  }
 0x536   : > { %v5345_v3 = vpop.eup %5344  ;;  %5356 = vtanh.f32 %v4699_v10  ;;  %v5199_v10 = vld [vmem:[%s6783_s6 + $0x38] ss:$0 sps:$4 sm:$0xff]  }
 0x537   : > { %v5347_v42 = vpop.eup %5346  ;;  %4487 = vmatpush3.bf16.msra.mxu1 %v5169_v34  ;;  %v5198_v34 = vld [vmem:[%s6783_s6 + $0x30] sm:$0xff]  }
 0x538   : > { %v5349_v11 = vpop.eup %5348  ;;  %v3197_v43 = vadd.f32 %v5347_v42, %v5343_v37  ;;  %4488 = vmatprep.subr.bf16.mxu1 %v5427_v20  ;;  %v3851_v37 = vsel %vm2132_vm1, %v5199_v10, 0 }
 0x539   : > { %v3198_v4 = vadd.f32 %v5349_v11, %v5345_v3  ;;  %v3352_v3 = vld [vmem:[%s6785_s8 + $0x2] ss:$0 sm:$0xff] }
 0x53a   : > { %v3223_v36 = vpack.c.bf16 %v3197_v43, %v3195_v59  ;;  %v5191_v59 = vld [vmem:[%s6782_s5 + $0xc0] sm:$0xff]  }
 0x53b   : > { %v3224_v35 = vpack.c.bf16 %v3198_v4, %v3196_v31  ;;  %4489 = vmatpush3.bf16.msra.mxu1 %v5170_v62  ;;  %v5193_v31 = vld [vmem:[%s6783_s6 + $0x8] sm:$0xff]  }
 0x53c   : > { %4490 = vmatprep.subr.bf16.mxu1 %v5427_v20 }
 0x53d   : > { %v5351_v38 = vpop.eup %5350  ;;  %4344 = vmatprep.mubr.msk.bf16.mxu1 %vm561_vm0, %v3224_v35  ;;  %v5200_v35 = vld [vmem:[%s6784_s7] sm:$0xff]  }
 0x53e   : > { %v5353_v21 = vpop.eup %5352  ;;  %3337 = vmatmul.mubr.bf16.gmra.mrb[84].mxu1 %v3223_v36 }
 0x53f   : > { %v5355_v12 = vpop.eup %5354  ;;  %4491 = vmatpush3.bf16.msra.mxu1 %v5171_v41 }
 0x540   : > { %v5357_v45 = vpop.eup %5356  ;;  %v3199_v46 = vadd.f32 %v5355_v12, %v5351_v38  ;;  %4496 = vmatprep.subr.bf16.mxu1 %v5427_v20  ;;  %v5201_v38 = vld [vmem:[%s6784_s7 + $0x8] sm:$0xff]   ;;  %v5203_v12 = vld [vmem:[%s6784_s7 + $0x18] sm:$0xff]  }
 0x541   : > { %v3200_v22 = vadd.f32 %v5357_v45, %v5353_v21  ;;  %v5202_v21 = vld [vmem:[%s6784_s7 + $0x10] sm:$0xff]   ;;  %v5204_v45 = vld [vmem:[%s6784_s7 + $0x20] sm:$0xff]  }
 0x542   : > { %v3225_v49 = vpack.c.bf16 %v3199_v46, %v3199_v46  ;;  %v5205_v46 = vld [vmem:[%s6784_s7 + $0x28] ss:$0 sps:$4 sm:$0x33]  }
 0x543   : > { %v3226_v47 = vpack.c.bf16 %v3200_v22, %v3200_v22  ;;  %v3944_v22 = vsel %vm2314_vm3, %v5205_v46, 0 }
 0x545   : > { %4345 = vmatprep.mubr.msk.bf16.mxu1 %vm561_vm0, %v3226_v47  ;;  %v3800_v47 = vld [vmem:[%s6785_s8 + $0x3] ss:$0 sm:$0xff] }
 0x546   : > { %3345 = vmatmul.mubr.bf16.gmra.mrb[88].mxu1 %v3225_v49 }
 0x547   : > { %4492 = vmatprep.mubr.msk.bf16.mxu1 %vm5428_vm5, %v5427_v20 }
 0x601   : > { %v3330_v23 = vpop.f32.mrb[80].mxu1 }
 0x602   : > { %v3363_v51 = vpack.c.bf16 %v3330_v23, %v3330_v23  ;;  %v3332_v52 = vpop.f32.mrb[81].mxu1 }
 0x603   : > { %v3333_v54 = vpop.f32.mrb[82].mxu1 }
 0x604   : > { %v3335_v13 = vpop.f32.mrb[83].mxu1  ;;  %4493 = vmatmul.mubr.msk.bf16.vlgmr.msra.gmra.mrb[92].mxu1 %vm3394_vm6, %v3363_v51  ;;  %v3450_v16 = vpack.c.bf16 %v3333_v54, %v3333_v54 }
 0x605   : > { %4497 = vmatpush3.bf16.msra.mxu1 %v5172_v24  ;;  %4506 = vmatprep.mubr.msk.bf16.mxu1 %vm5428_vm5, %v5427_v20  ;;  %v3906_v13 = vld [vmem:[%s6785_s8 + $0x4] ss:$0 sm:$0xff] }
 0x606   : > { %4498 = vmatprep.subr.bf16.mxu1 %v5427_v20 }
 0x609   : > { %4499 = vmatpush3.bf16.msra.mxu1 %v5173_v5 }
 0x60a   : > { %4500 = vmatprep.subr.bf16.mxu1 %v5427_v20 }
 0x60d   : > { %4501 = vmatpush3.bf16.msra.mxu1 %v5174_v44 }
 0x60e   : > { %4502 = vmatprep.subr.bf16.mxu1 %v5427_v20 }
 0x611   : > { %4503 = vmatpush3.bf16.msra.mxu1 %v5175_v48  ;;  %v3338_v14 = vpop.f32.mrb[84].mxu1 }
 0x612   : > { %v3340_v6 = vpop.f32.mrb[85].mxu1  ;;  %4504 = vmatprep.subr.bf16.mxu1 %v5427_v20  ;;  %v3536_v1 = vpack.c.bf16 %v3338_v14, %v3338_v14 }
 0x613   : > { %v3341_v25 = vpop.f32.mrb[86].mxu1 }
 0x614   : > { %v3343_v15 = vpop.f32.mrb[87].mxu1  ;;  %v3622_v18 = vpack.c.bf16 %v3341_v25, %v3341_v25 }
 0x615   : > { %4505 = vmatpush3.bf16.msra.mxu1 %v5176_v55 }
 0x616   : > { %4510 = vmatprep.subr.bf16.mxu1 %v5427_v20 }
 0x618   : > { %4507 = vmatmul.mubr.msk.bf16.vlgmr.msra.gmra.mrb[92].mxu1 %vm3394_vm6, %v3450_v16 }
 0x619   : > { %4511 = vmatpush3.bf16.msra.mxu1 %v5177_v57  ;;  %v3346_v26 = vpop.f32.mrb[88].mxu1  ;;  %4520 = vmatprep.mubr.msk.bf16.mxu1 %vm5428_vm5, %v5427_v20 }
 0x61a   : > { %v3348_v27 = vpop.f32.mrb[89].mxu1  ;;  %4512 = vmatprep.subr.bf16.mxu1 %v5427_v20  ;;  %v3708_v2 = vpack.c.bf16 %v3346_v26, %v3346_v26 }
 0x61b   : > { %v3349_v7 = vpop.f32.mrb[90].mxu1 }
 0x61c   : > { %v3350_v28 = vpop.f32.mrb[91].mxu1 }
 0x61d   : > { %4513 = vmatpush3.bf16.msra.mxu1 %v5178_v50 }
 0x61e   : > { %4514 = vmatprep.subr.bf16.mxu1 %v5427_v20 }
 0x621   : > { %4515 = vmatpush3.bf16.msra.mxu1 %v5179_v56 }
 0x622   : > { %4516 = vmatprep.subr.bf16.mxu1 %v5427_v20 }
 0x625   : > { %4517 = vmatpush3.bf16.msra.mxu1 %v5180_v53 }
 0x626   : > { %4518 = vmatprep.subr.bf16.mxu1 %v5427_v20 }
 0x629   : > { %4519 = vmatpush3.bf16.msra.mxu1 %v5181_v58 }
 0x62a   : > { %4524 = vmatprep.subr.bf16.mxu1 %v5427_v20 }
 0x62c   : > { %4521 = vmatmul.mubr.msk.bf16.vlgmr.msra.gmra.mrb[92].mxu1 %vm3394_vm6, %v3536_v1 }
 0x62d   : > { %4525 = vmatpush3.bf16.msra.mxu1 %v5182_v8  ;;  %4534 = vmatprep.mubr.msk.bf16.mxu1 %vm5428_vm5, %v5427_v20 }
 0x62e   : > { %4526 = vmatprep.subr.bf16.mxu1 %v5427_v20 }
 0x631   : > { %4527 = vmatpush3.bf16.msra.mxu1 %v5183_v60 }
 0x632   : > { %4528 = vmatprep.subr.bf16.mxu1 %v5427_v20 }
 0x635   : > { %4529 = vmatpush3.bf16.msra.mxu1 %v5184_v61 }
 0x636   : > { %4530 = vmatprep.subr.bf16.mxu1 %v5427_v20 }
 0x639   : > { %4531 = vmatpush3.bf16.msra.mxu1 %v5185_v17 }
 0x63a   : > { %4532 = vmatprep.subr.bf16.mxu1 %v5427_v20 }
 0x63d   : > { %4533 = vmatpush3.bf16.msra.mxu1 %v5186_v63 }
 0x63e   : > { %4538 = vmatprep.subr.bf16.mxu1 %v5427_v20 }
 0x640   : > { %4535 = vmatmul.mubr.msk.bf16.vlgmr.msra.gmra.mrb[92].mxu1 %vm3394_vm6, %v3622_v18 }
 0x641   : > { %4539 = vmatpush3.bf16.msra.mxu1 %v5187_v0  ;;  %4548 = vmatprep.mubr.msk.bf16.mxu1 %vm5428_vm5, %v5427_v20 }
 0x642   : > { %4540 = vmatprep.subr.bf16.mxu1 %v5427_v20 }
 0x645   : > { %4541 = vmatpush3.bf16.msra.mxu1 %v5188_v9 }
 0x646   : > { %4542 = vmatprep.subr.bf16.mxu1 %v5427_v20 }
 0x649   : > { %4543 = vmatpush3.bf16.msra.mxu1 %v5189_v30 }
 0x64a   : > { %4544 = vmatprep.subr.bf16.mxu1 %v5427_v20 }
 0x64d   : > { %4545 = vmatpush3.bf16.msra.mxu1 %v5190_v19 }
 0x64e   : > { %4546 = vmatprep.subr.bf16.mxu1 %v5427_v20 }
 0x651   : > { %4547 = vmatpush3.bf16.msra.mxu1 %v5191_v59 }
 0x652   : > { %4552 = vmatprep.subr.bf16.mxu1 %v5427_v20 }
 0x654   : > { %4549 = vmatmul.mubr.msk.bf16.vlgmr.msra.gmra.mrb[92].mxu1 %vm3394_vm6, %v3708_v2 }
 0x655   : > { %4553 = vmatpush3.bf16.msra.mxu1 %v5192_v29  ;;  %4568 = vmatprep.mubr.msk.bf16.mxu1 %vm5428_vm5, %v5427_v20 }
 0x656   : > { %4554 = vmatprep.subr.bf16.mxu1 %v5427_v20 }
 0x659   : > { %4555 = vmatpush3.bf16.msra.mxu1 %v5193_v31 }
 0x65a   : > { %4556 = vmatprep.subr.bf16.mxu1 %v5427_v20 }
 0x65d   : > { %4557 = vmatpush3.bf16.msra.mxu1 %v5194_v32 }
 0x65e   : > { %4558 = vmatprep.subr.bf16.mxu1 %v5427_v20 }
 0x661   : > { %4559 = vmatpush3.bf16.msra.mxu1 %v5195_v39 }
 0x662   : > { %4560 = vmatprep.subr.bf16.mxu1 %v5427_v20 }
 0x665   : > { %4561 = vmatpush3.bf16.msra.mxu1 %v5196_v40 }
 0x666   : > { %4562 = vmatprep.subr.bf16.mxu1 %v5427_v20 }
 0x669   : > { %4563 = vmatpush3.bf16.msra.mxu1 %v5197_v33 }
 0x66a   : > { %4564 = vmatprep.subr.bf16.mxu1 %v5427_v20 }
 0x66d   : > { %4565 = vmatpush3.bf16.msra.mxu1 %v5198_v34 }
 0x66e   : > { %4566 = vmatprep.subr.bf16.mxu1 %v5427_v20 }
 0x671   : > { %4567 = vmatpush3.bf16.msra.mxu1 %v3851_v37 }
 0x672   : > { %4572 = vmatprep.subr.bf16.mxu1 %v5427_v20 }
 0x727   : > { %v3776_v42 = vpop.f32.mrb[92].mxu1 }
 0x728   : > { %v4700_v62 = vadd.f32 %v3776_v42, %v3352_v3  ;;  %v4550_v11 = vpop.f32.mrb[93].mxu1 }
 0x729   : > { %v3779_v43 = vpop.f32.mrb[94].mxu1 }
 0x72a   : > { %5358 = vtanh.f32 %v4700_v62  ;;  %v4551_v4 = vpop.f32.mrb[95].mxu1 }
 0x734   : > { %v5359_v36 = vpop.eup %5358 }
 0x735   : > { %v3799_v41 = vpack.c.bf16 %v5359_v36, %v5359_v36 }
 0x737   : > { %4569 = vmatmul.mubr.msk.bf16.vlgmr.msra.gmra.mrb[96].mxu1 %vm3846_vm7, %v3799_v41 }
 0x738   : > { %4573 = vmatpush3.bf16.msra.mxu1 %v5200_v35  ;;  %4584 = vmatprep.mubr.msk.bf16.mxu1 %vm5428_vm5, %v5427_v20 }
 0x739   : > { %4574 = vmatprep.subr.bf16.mxu1 %v5427_v20 }
 0x73c   : > { %4575 = vmatpush3.bf16.msra.mxu1 %v5201_v38 }
 0x73d   : > { %4576 = vmatprep.subr.bf16.mxu1 %v5427_v20 }
 0x740   : > { %4577 = vmatpush3.bf16.msra.mxu1 %v5202_v21 }
 0x741   : > { %4578 = vmatprep.subr.bf16.mxu1 %v5427_v20 }
 0x744   : > { %4579 = vmatpush3.bf16.msra.mxu1 %v5203_v12 }
 0x745   : > { %4580 = vmatprep.subr.bf16.mxu1 %v5427_v20 }
 0x748   : > { %4581 = vmatpush3.bf16.msra.mxu1 %v5204_v45 }
 0x749   : > { %4582 = vmatprep.subr.bf16.mxu1 %v5427_v20 }
 0x74c   : > { %4583 = vmatpush3.bf16.msra.mxu1 %v3944_v22 }
 0x80a   : > { %v3887_v49 = vpop.f32.mrb[96].mxu1 }
 0x80b   : > { %v3888_v23 = vadd.f32 %v3887_v49, %v3800_v47  ;;  %v4570_v24 = vpop.f32.mrb[97].mxu1 }
 0x80c   : > { %v3890_v51 = vpop.f32.mrb[98].mxu1 }
 0x80d   : > { %5360 = vtanh.f32 %v3888_v23  ;;  %v4571_v52 = vpop.f32.mrb[99].mxu1 }
 0x817   : > { %v5361_v54 = vpop.eup %5360 }
 0x818   : > { %v3905_v20 = vpack.c.bf16 %v5361_v54, %v5361_v54 }
 0x81a   : > { %4585 = vmatmul.mubr.msk.bf16.vlgmr.msra.gmra.mrb[100].mxu1 %vm2298_vm4, %v3905_v20 }
 0x8ed   : > { %v3980_v5 = vpop.f32.mrb[100].mxu1 }
 0x8ee   : > { %v3981_v44 = vadd.f32 %v3980_v5, %v3906_v13  ;;  %v4586_v48 = vpop.f32.mrb[101].mxu1 }
 0x8ef   : > { %v3983_v14 = vpop.f32.mrb[102].mxu1 }
 0x8f0   : > { %3986 = vst [vmem:[%s488_s16] sm:$0xff] %v3981_v44  ;;  %v4587_v55 = vpop.f32.mrb[103].mxu1 }
 0x8f1   : > { %5375 = shalt.err (!%p5372_p5)
}
 0x8f2   : > { %s5376_s14 = scalar_lea.hbm %s6733_s23, 128  ;;  %s5380_s16 = scalar_lea.hbm %s6786_s9, 256 }
 0x8f3   : > { %p5377_p7 = scmp.ne.s32.totalorder %s6733_s23, %s5376_s14  ;;  %p5381_p12 = scmp.lt.u32.totalorder %s6733_s23, %s6786_s9 }
 0x8f4   : > { %p5382_p13 = scmp.lt.u32.totalorder %s5380_s16, %s5376_s14  ;;  %p5384_p1 = scmp.lt.u32.totalorder %s5376_s14, %s6733_s23 }
 0x8f5   : > { %p5378_p10 = pnand %p5377_p7, %p5518_p6 }
 0x8f6   : > { %p5383_p0 = por %p5382_p13, %p5381_p12 }
 0x8f7   : > { %p5379_p11 = pneg %p5378_p10 }
 0x8f8   : > { %p5385_p2 = por %p5384_p1, %p5383_p0 }
 0x8fa   : > { %p5386_p3 = pnand %p5385_p2, %p5379_p11 }
 0x8fc   : > { %5389 = shalt.err (!%p5386_p3)
}
 0x8fd   : > { %4989 = dma.vmem_to_hbm [thread:$0]  (%p5518_p6), %s6735_s17, 128, %s6733_s23, %s3988_s24  }
 0x8fe PF: > { %s4013_s13 = sand.u32 1, %s5412_s30   ;;  %p4992_p4 = pnand %p4068_p9, %p5522_p8 }
 0x8ff   : > { %s4014_s25 = scalar_lea.sflag [#allocation4], %s4013_s13 }
 0x900   : > { %5407 = dma.done.wait (!%p4992_p4), %s4014_s25, 128  }
 0x901   : > { %5409 = vsyncadd (!%p4992_p4), %s4014_s25, 4294967168  ;;  %p19_p5 = scmp.ge.s32.totalorder %s5503_s15, 4   ;;  %s6789_s30 = smov %s5416_s10 }
 0x902   : > { %s6790_s10 = smov %s5420_s11  ;;  %s6791_s11 = smov %s5516_s18 }
 0x903   : > { %s6792_s12 = smov %s5503_s15  ;;  %21 = sbr.rel (!%p19_p5) target bundleno = 3 (0x3), region = 147 }
 0x90a   :  { %4019 = vsyncpa [#allocation4], 1 }
 0x90b   :  { %4021 = vsyncpa [#allocation4 + $0x1], 1 }

</bundles_post_ra>
